<compile_context>
chip_gen: v7x
topology: tpu7x:2x2x1
jax: 0.10.0
libtpu: 0.0.40
codegen_flags: <defaults>
</compile_context>

<pallas_src>
import functools

import jax
import jax.numpy as jnp
import numpy as np
from jax.experimental import pallas as pl
from jax.experimental.pallas import tpu as pltpu


# ---------------------------------------------------------------------------
# GeometricPrior: computed once (input independent) -> (cm, k*k), plain JAX.
# ---------------------------------------------------------------------------
def _geometric_prior_flat(k, w1, b1, w2, b2):
    """w1:(mid,2) b1:(mid,) w2:(cm,mid) b2:(cm,)  ->  (cm, k*k) float32."""
    half = k // 2
    xr = jnp.arange(-half, half + 1, dtype=jnp.float32)
    x_pos = jnp.broadcast_to(xr[None, :], (k, k))          # x varies along cols
    yr = jnp.arange(half, -half - 1, -1, dtype=jnp.float32)
    y_pos = jnp.broadcast_to(yr[:, None], (k, k))          # y varies along rows
    pos = jnp.stack([x_pos.reshape(-1), y_pos.reshape(-1)], axis=-1)  # (kk, 2)
    h1 = jnp.maximum(pos @ w1.T.astype(jnp.float32) + b1[None, :], 0.0)
    out = h1 @ w2.T.astype(jnp.float32) + b2[None, :]      # (kk, cm)
    return out.T                                           # (cm, kk)


# ---------------------------------------------------------------------------
# nn.Unfold equivalent (channel-major, row-major kernel positions / locations)
# ---------------------------------------------------------------------------
def _unfold_nchw(t, k, stride, padding):
    """t: (B, C, H, W) -> ((B, C, k*k, h*w), h, w)."""
    B, C, H, W = t.shape
    h = (H + 2 * padding - k) // stride + 1
    w = (W + 2 * padding - k) // stride + 1
    tp = jnp.pad(t, ((0, 0), (0, 0), (padding, padding), (padding, padding)))
    cols = []
    for di in range(k):
        for dj in range(k):
            cols.append(
                jax.lax.slice(
                    tp,
                    (0, 0, di, dj),
                    (B, C, di + (h - 1) * stride + 1, dj + (w - 1) * stride + 1),
                    (1, 1, stride, stride),
                )
            )
    u = jnp.stack(cols, axis=2)                            # (B, C, kk, h, w)
    return u.reshape(B, C, k * k, h * w), h, w


def _conv1x1(x, w, b):
    return jnp.einsum("oc,bchw->bohw", w, x) + b[None, :, None, None]


# ---------------------------------------------------------------------------
# Pallas kernel: per-batch fused attention + grouped aggregation + embedding.
# ---------------------------------------------------------------------------
def _local_relation_kernel(key_ref, qc_ref, x_ref, gp_ref, wemb_ref, bemb_ref,
                           o_ref, *, groups):
    # key_ref: (cm, kk, L)   qc_ref: (cm, 1, L)   x_ref: (C, kk, L)
    # gp_ref : (cm, kk, 1)   wemb_ref: (C, C)     bemb_ref: (C, 1)
    # o_ref  : (1, C, L)
    keyu = key_ref[...]
    qc = qc_ref[...]
    xu = x_ref[...]
    gp = gp_ref[...]

    # appearance composability + geometric prior (all VPU broadcasts)
    logits = keyu * qc + gp                                 # (cm, kk, L)

    # softmax over the patch axis (axis=1), numerically stable
    mx = jnp.max(logits, axis=1, keepdims=True)             # (cm, 1, L)
    e = jnp.exp(logits - mx)
    denom = jnp.sum(e, axis=1, keepdims=True)               # (cm, 1, L)
    wgt = e / denom                                         # (cm, kk, L)

    # broadcast the cm attention maps to all m channel groups: channel = g*cm+c'
    wfull = jnp.concatenate([wgt] * groups, axis=0)         # (C, kk, L)
    pre = jnp.sum(wfull * xu, axis=1)                       # (C, L)

    # fused 1x1 embedding conv (lane-dense output: L on lanes)
    y = jnp.dot(wemb_ref[...], pre,
                preferred_element_type=jnp.float32) + bemb_ref[...]
    o_ref[0] = y.astype(o_ref.dtype)


# ---------------------------------------------------------------------------
# Full LocalRelation forward.
# ---------------------------------------------------------------------------
def local_relation_forward(x, params, *, k, stride, padding, m):
    B, C, H, W = x.shape
    assert C % m == 0, "channels must be divisible by m"
    cm = C // m
    kk = k * k

    # 1x1 key / query projections (plain channel matmuls; left to XLA)
    key = _conv1x1(x, params["wk"], params["bk"])           # (B, cm, H, W)
    query = _conv1x1(x, params["wq"], params["bq"])         # (B, cm, H, W)

    # im2col (glue; see TODO at top of file)
    key_unf, h, w = _unfold_nchw(key, k, stride, padding)   # (B, cm, kk, L)
    q_unf, _, _ = _unfold_nchw(query, k, stride, padding)   # (B, cm, kk, L)
    x_unf, _, _ = _unfold_nchw(x, k, stride, padding)       # (B, C,  kk, L)
    L = h * w
    qc = q_unf[:, :, kk // 2, :]                            # (B, cm, L) patch center

    # GeometricPrior: input independent -> computed once, constant-folds under jit.
    gp = _geometric_prior_flat(k, params["w1"], params["b1"],
                               params["w2"], params["b2"])  # (cm, kk)

    key_m = key_unf.reshape(B * cm, kk, L).astype(jnp.float32)
    qc_m = qc.reshape(B * cm, 1, L).astype(jnp.float32)
    x_m = x_unf.reshape(B * C, kk, L).astype(jnp.float32)
    gp_m = gp.reshape(cm, kk, 1).astype(jnp.float32)
    wemb = params["we"].astype(jnp.float32)                 # (C, C)
    bemb = params["be"].reshape(C, 1).astype(jnp.float32)   # (C, 1)

    out = pl.pallas_call(
        functools.partial(_local_relation_kernel, groups=m),
        out_shape=jax.ShapeDtypeStruct((B, C, L), jnp.float32),
        grid=(B,),
        in_specs=[
            pl.BlockSpec((cm, kk, L), lambda b: (b, 0, 0)),   # key patches
            pl.BlockSpec((cm, 1, L), lambda b: (b, 0, 0)),    # query center
            pl.BlockSpec((C, kk, L), lambda b: (b, 0, 0)),    # x patches
            pl.BlockSpec((cm, kk, 1), lambda b: (0, 0, 0)),   # geometric prior
            pl.BlockSpec((C, C), lambda b: (0, 0)),           # embedding weight
            pl.BlockSpec((C, 1), lambda b: (0, 0)),           # embedding bias
        ],
        out_specs=pl.BlockSpec((1, C, L), lambda b: (b, 0, 0)),
        compiler_params=pltpu.CompilerParams(
            dimension_semantics=("parallel",)),
    )(key_m, qc_m, x_m, gp_m, wemb, bemb)

    return out.reshape(B, C, h, w)


# ---------------------------------------------------------------------------
# Pure-JAX reference mirroring the PyTorch module step by step.
# ---------------------------------------------------------------------------
def _reference_gp(k, w1, b1, w2, b2):
    half = k // 2
    xr = jnp.arange(-half, half + 1, dtype=jnp.float32).reshape(1, k)
    x_position = jnp.broadcast_to(xr, (k, k))
    yr = jnp.arange(half, -half - 1, -1, dtype=jnp.float32).reshape(k, 1)
    y_position = jnp.broadcast_to(yr, (k, k))
    position = jnp.stack([x_position, y_position], axis=0)[None]   # (1,2,k,k)
    h1 = jnp.einsum("oc,nchw->nohw", w1, position) + b1[None, :, None, None]
    h1 = jnp.maximum(h1, 0.0)
    o = jnp.einsum("oc,nchw->nohw", w2, h1) + b2[None, :, None, None]
    return o.reshape(1, o.shape[1], k * k)                          # (1, cm, kk)


def _reference_forward(x, p, *, k, stride, padding, m):
    B, C, H, W = x.shape
    cm = C // m
    kk = k * k
    key = _conv1x1(x, p["wk"], p["bk"])
    query = _conv1x1(x, p["wq"], p["bq"])

    ku4, h, w = _unfold_nchw(key, k, stride, padding)
    qu4, _, _ = _unfold_nchw(query, k, stride, padding)
    L = h * w
    ku = jnp.transpose(ku4.reshape(B, cm * kk, L), (0, 2, 1)).reshape(B, L, cm, kk)
    qu = jnp.transpose(qu4.reshape(B, cm * kk, L), (0, 2, 1)).reshape(B, L, cm, kk)
    ku = jnp.transpose(ku, (0, 2, 1, 3))                            # (B, cm, L, kk)
    qu = jnp.transpose(qu, (0, 2, 1, 3))
    ac = ku * qu[:, :, :, kk // 2:kk // 2 + 1]

    gp = _reference_gp(k, p["w1"], p["b1"], p["w2"], p["b2"])       # (1, cm, kk)
    weight = jax.nn.softmax(ac + gp[:, :, None, :], axis=-1)        # (B, cm, L, kk)
    weight = weight.reshape(B, 1, cm, L, k, k)

    xu4, _, _ = _unfold_nchw(x, k, stride, padding)
    xu = jnp.transpose(xu4.reshape(B, C * kk, L), (0, 2, 1)).reshape(B, L, C, kk)
    xu = jnp.transpose(xu, (0, 2, 1, 3))                            # (B, C, L, kk)
    xu = xu.reshape(B, m, cm, L, k, k)

    output = (weight * xu).reshape(B, C, L, kk)
    output = jnp.sum(output, axis=3).reshape(B, C, h, w)
    return _conv1x1(output, p["we"], p["be"])


if __name__ == "__main__":
    B, C, H, W = 2, 32, 12, 12
    m = 8
    k = 3
    stride = 1
    padding = 1
    cm = C // m                 # 4
    mid = int(0.5 * cm)         # 2 (GeometricPrior reduction=0.5)

    rng = jax.random.PRNGKey(0)
    ks = jax.random.split(rng, 11)
    def _rand(i, shape, scale):
        return jax.random.normal(ks[i], shape, dtype=jnp.float32) * scale

    params = {
        "wk": _rand(0, (cm, C), 0.2), "bk": _rand(1, (cm,), 0.1),
        "wq": _rand(2, (cm, C), 0.2), "bq": _rand(3, (cm,), 0.1),
        "w1": _rand(4, (mid, 2), 0.3), "b1": _rand(5, (mid,), 0.1),
        "w2": _rand(6, (cm, mid), 0.3), "b2": _rand(7, (cm,), 0.1),
        "we": _rand(8, (C, C), 0.1), "be": _rand(9, (C,), 0.1),
    }
    x = jax.random.normal(ks[10], (B, C, H, W), dtype=jnp.float32)

    fwd = jax.jit(functools.partial(local_relation_forward,
                                    k=k, stride=stride, padding=padding, m=m))
    out = jax.block_until_ready(fwd(x, params))

    ref = _reference_forward(x, params, k=k, stride=stride, padding=padding, m=m)
    assert out.shape == (B, C, H, W), out.shape
    np.testing.assert_allclose(np.asarray(out), np.asarray(ref),
                               rtol=1e-4, atol=1e-4)
    print("KERNEL_OK")
</pallas_src>

<mosaic_0001>
module attributes {stable_mosaic.version = 11 : i64} {
  func.func @_local_relation_kernel(%arg0: i32, %arg1: memref<4x9x144xf32, #tpu.memory_space<vmem>>, %arg2: memref<4x1x144xf32, #tpu.memory_space<vmem>>, %arg3: memref<32x9x144xf32, #tpu.memory_space<vmem>>, %arg4: memref<4x9x1xf32, #tpu.memory_space<vmem>>, %arg5: memref<32x32xf32, #tpu.memory_space<vmem>>, %arg6: memref<32x1xf32, #tpu.memory_space<vmem>>, %arg7: memref<1x32x144xf32, #tpu.memory_space<vmem>>) attributes {dimension_semantics = [#tpu.dimension_semantics<parallel>], iteration_bounds = array<i64: 2>, scalar_prefetch = 0 : i64, scratch_operands = 0 : i64, tpu.core_type = #tpu.core_type<tc>, window_params = [{transform_indices = @transform_0, window_bounds = array<i64: 4, 9, 144>}, {transform_indices = @transform_1, window_bounds = array<i64: 4, 1, 144>}, {transform_indices = @transform_2, window_bounds = array<i64: 32, 9, 144>}, {pipeline_mode = #tpu.pipeline_mode<synchronous>, transform_indices = @transform_3, window_bounds = array<i64: 4, 9, 1>}, {pipeline_mode = #tpu.pipeline_mode<synchronous>, transform_indices = @transform_4, window_bounds = array<i64: 32, 32>}, {pipeline_mode = #tpu.pipeline_mode<synchronous>, transform_indices = @transform_5, window_bounds = array<i64: 32, 1>}, {transform_indices = @transform_6, window_bounds = array<i64: 1, 32, 144>}]} {
    %c0 = arith.constant 0 : index
    %c0_0 = arith.constant 0 : index
    %c0_1 = arith.constant 0 : index
    %0 = vector.load %arg1[%c0, %c0_0, %c0_1] : memref<4x9x144xf32, #tpu.memory_space<vmem>>, vector<4x9x144xf32>
    %c0_2 = arith.constant 0 : index
    %c0_3 = arith.constant 0 : index
    %c0_4 = arith.constant 0 : index
    %1 = vector.load %arg2[%c0_2, %c0_3, %c0_4] : memref<4x1x144xf32, #tpu.memory_space<vmem>>, vector<4x1x144xf32>
    %c0_5 = arith.constant 0 : index
    %c0_6 = arith.constant 0 : index
    %c0_7 = arith.constant 0 : index
    %2 = vector.load %arg3[%c0_5, %c0_6, %c0_7] : memref<32x9x144xf32, #tpu.memory_space<vmem>>, vector<32x9x144xf32>
    %c0_8 = arith.constant 0 : index
    %c0_9 = arith.constant 0 : index
    %c0_10 = arith.constant 0 : index
    %3 = vector.load %arg4[%c0_8, %c0_9, %c0_10] : memref<4x9x1xf32, #tpu.memory_space<vmem>>, vector<4x9x1xf32>
    %4 = vector.broadcast %1 : vector<4x1x144xf32> to vector<4x9x144xf32>
    %5 = arith.mulf %0, %4 : vector<4x9x144xf32>
    %6 = vector.broadcast %3 : vector<4x9x1xf32> to vector<4x9x144xf32>
    %7 = arith.addf %5, %6 : vector<4x9x144xf32>
    %cst = arith.constant dense<0xFF800000> : vector<4x144xf32>
    %8 = vector.multi_reduction <maximumf>, %7, %cst [1] : vector<4x9x144xf32> to vector<4x144xf32>
    %9 = vector.shape_cast %8 : vector<4x144xf32> to vector<4x1x144xf32>
    %10 = vector.broadcast %9 : vector<4x1x144xf32> to vector<4x9x144xf32>
    %11 = arith.subf %7, %10 : vector<4x9x144xf32>
    %12 = math.exp %11 : vector<4x9x144xf32>
    %cst_11 = arith.constant dense<0.000000e+00> : vector<4x144xf32>
    %13 = vector.multi_reduction <add>, %12, %cst_11 [1] : vector<4x9x144xf32> to vector<4x144xf32>
    %14 = vector.shape_cast %13 : vector<4x144xf32> to vector<4x1x144xf32>
    %15 = vector.broadcast %14 : vector<4x1x144xf32> to vector<4x9x144xf32>
    %16 = arith.divf %12, %15 : vector<4x9x144xf32>
    %17 = tpu.concatenate %16, %16, %16, %16, %16, %16, %16, %16 in 0 : vector<4x9x144xf32>, vector<4x9x144xf32>, vector<4x9x144xf32>, vector<4x9x144xf32>, vector<4x9x144xf32>, vector<4x9x144xf32>, vector<4x9x144xf32>, vector<4x9x144xf32> -> vector<32x9x144xf32>
    %18 = arith.mulf %17, %2 : vector<32x9x144xf32>
    %cst_12 = arith.constant dense<0.000000e+00> : vector<32x144xf32>
    %19 = vector.multi_reduction <add>, %18, %cst_12 [1] : vector<32x9x144xf32> to vector<32x144xf32>
    %c0_13 = arith.constant 0 : index
    %c0_14 = arith.constant 0 : index
    %20 = vector.load %arg5[%c0_13, %c0_14] : memref<32x32xf32, #tpu.memory_space<vmem>>, vector<32x32xf32>
    %cst_15 = arith.constant dense<0.000000e+00> : vector<32x144xf32>
    %21 = tpu.matmul %20, %19, %cst_15 {dimension_numbers = #tpu.dot_dimension_numbers<[1], [0], [0], [1], [0, 0, 1, 1], [], []>} : vector<32x32xf32>, vector<32x144xf32>, vector<32x144xf32> -> vector<32x144xf32>
    %c0_16 = arith.constant 0 : index
    %c0_17 = arith.constant 0 : index
    %22 = vector.load %arg6[%c0_16, %c0_17] : memref<32x1xf32, #tpu.memory_space<vmem>>, vector<32x1xf32>
    %23 = vector.broadcast %22 : vector<32x1xf32> to vector<32x144xf32>
    %24 = arith.addf %21, %23 : vector<32x144xf32>
    %c0_18 = arith.constant 0 : index
    %c0_19 = arith.constant 0 : index
    %c0_20 = arith.constant 0 : index
    %25 = vector.load %arg7[%c0_18, %c0_19, %c0_20] : memref<1x32x144xf32, #tpu.memory_space<vmem>>, vector<1x32x144xf32>
    %26 = vector.shape_cast %25 : vector<1x32x144xf32> to vector<32x144xf32>
    %27 = vector.shape_cast %24 : vector<32x144xf32> to vector<1x32x144xf32>
    tpu.vector_store %arg7[%c0_18, %c0_19, %c0_20], %27 {strides = array<i32>} : memref<1x32x144xf32, #tpu.memory_space<vmem>>, vector<1x32x144xf32>,
    return
  }
  func.func @transform_0(%arg0: i32) -> (i32, i32, i32) {
    %c0_i32 = arith.constant 0 : i32
    %c0_i32_0 = arith.constant 0 : i32
    %c0_i32_1 = arith.constant 0 : i32
    return %arg0, %c0_i32, %c0_i32_0 : i32, i32, i32
  }
  func.func @transform_1(%arg0: i32) -> (i32, i32, i32) {
    %c0_i32 = arith.constant 0 : i32
    %c0_i32_0 = arith.constant 0 : i32
    %c0_i32_1 = arith.constant 0 : i32
    return %arg0, %c0_i32, %c0_i32_0 : i32, i32, i32
  }
  func.func @transform_2(%arg0: i32) -> (i32, i32, i32) {
    %c0_i32 = arith.constant 0 : i32
    %c0_i32_0 = arith.constant 0 : i32
    %c0_i32_1 = arith.constant 0 : i32
    return %arg0, %c0_i32, %c0_i32_0 : i32, i32, i32
  }
  func.func @transform_3(%arg0: i32) -> (i32, i32, i32) {
    %c0_i32 = arith.constant 0 : i32
    %c0_i32_0 = arith.constant 0 : i32
    %c0_i32_1 = arith.constant 0 : i32
    %c0_i32_2 = arith.constant 0 : i32
    return %c0_i32, %c0_i32_0, %c0_i32_1 : i32, i32, i32
  }
  func.func @transform_4(%arg0: i32) -> (i32, i32) {
    %c0_i32 = arith.constant 0 : i32
    %c0_i32_0 = arith.constant 0 : i32
    %c0_i32_1 = arith.constant 0 : i32
    return %c0_i32, %c0_i32_0 : i32, i32
  }
  func.func @transform_5(%arg0: i32) -> (i32, i32) {
    %c0_i32 = arith.constant 0 : i32
    %c0_i32_0 = arith.constant 0 : i32
    %c0_i32_1 = arith.constant 0 : i32
    return %c0_i32, %c0_i32_0 : i32, i32
  }
  func.func @transform_6(%arg0: i32) -> (i32, i32, i32) {
    %c0_i32 = arith.constant 0 : i32
    %c0_i32_0 = arith.constant 0 : i32
    %c0_i32_1 = arith.constant 0 : i32
    return %arg0, %c0_i32, %c0_i32_0 : i32, i32, i32
  }
}

</mosaic_0001>

<bundles_post_ra>
// kernel: local_relation_forward.1
= control target key start
LH: loop header
LB: loop body
LE: loop exit
PB: predicated region body
PF: predicated region fallthrough
CT: control target
= control target key end

     0   :  { %s1952_s21 = smov 0   ;;  %s2929_s0 = inlined_call_operand.vmem [shape: f32[8,9,144], index: 0, kind: input, shape index: {}]   ;;  %s2930_s1 = inlined_call_operand.vmem [shape: f32[8,1,144], index: 1, kind: input, shape index: {}]   ;;  %s2931_s2 = inlined_call_operand.vmem [shape: f32[64,9,144], index: 2, kind: input, shape index: {}]   ;;  %s2932_s3 = inlined_call_operand.vmem [shape: f32[4,9,1], index: 3, kind: input, shape index: {}]   ;;  %s2933_s4 = inlined_call_operand.vmem [shape: f32[32,32], index: 4, kind: input, shape index: {}]   ;;  %s2934_s5 = inlined_call_operand.vmem [shape: f32[32,1], index: 5, kind: input, shape index: {}]   ;;  %s2935_s6 = inlined_call_operand.vmem [shape: f32[2,32,144], index: 6, kind: output, shape index: {}]  }
   0x1 LB: > { %s1958_s22 = sadd.s32 4294967295, %s1913_s21   ;;  %p1815_p0 = scmp.ge.s32.totalorder %s1913_s21, 1  ;;  %s1913_s21 = sphi %s1952_s21, %s16_s21  }
   0x2   : > { %p237_p1 = scmp.lt.s32.totalorder %s1913_s21, 3 }
   0x4   : > { %p238_p2 = pnand %p1815_p0, %p237_p1 }
   0x5   : > { %v454_v0 = vld [vmem:[%s2932_s3 + $0x10] sm:$0xff] (!%p238_p2)  ;;  %v452_v1 = vld [vmem:[%s2932_s3] sm:$0xff] (!%p238_p2)  ;;  %v1915_v2 = vmov (!%p238_p2), 0   ;;  %v455_v3 = vld [vmem:[%s2932_s3 + $0x18] sm:$0x1] (!%p238_p2)  ;;  %s1816_s25 = sshll.u32 (!%p238_p2), %s1958_s22, 2  ;;  %v464_v13 = vlaneseq (!%p238_p2) }
   0x6   : > { %241 = sbr.rel (%p238_p2) target bundleno = 615 (0x267), region = 44  ;;  %1858 = vset.pattern.permute.xlu1 (!%p238_p2), %v1915_v2  ;;  %1857 = vset.pattern.permute.xlu0 (!%p238_p2), %v1915_v2  ;;  %v453_v4 = vld [vmem:[%s2932_s3 + $0x8] sm:$0x1] (!%p238_p2)  ;;  %v456_v6 = vld [vmem:[%s2932_s3 + $0x20] sm:$0xff] (!%p238_p2)  ;;  %v459_v7 = vld [vmem:[%s2932_s3 + $0x38] sm:$0x1] (!%p238_p2) }
   0x7   : > { %532 = vperm.xlu1 (!%p238_p2), %1858, %v454_v0   ;;  %522 = vperm.xlu0 (!%p238_p2), %1857, %v452_v1   ;;  %v457_v5 = vld [vmem:[%s2932_s3 + $0x28] sm:$0x1] (!%p238_p2)  ;;  %v458_v8 = vld [vmem:[%s2932_s3 + $0x30] sm:$0xff] (!%p238_p2)  ;;  %v1463_v10 = vld [vmem:[%s2934_s5] sm:$0xff] (!%p238_p2)  ;;  %p280_p3 = scmp.lt.s32.totalorder (!%p238_p2), %s1816_s25, 7  ;;  %v465_v14 = vshrl.u32 (!%p238_p2), %v464_v13, 7 }
   0x8   : > { %v1464_v9 = vld [vmem:[%s2934_s5 + $0x8] sm:$0xff] (!%p238_p2)  ;;  %v1466_v11 = vld [vmem:[%s2934_s5 + $0x18] sm:$0xff] (!%p238_p2)  ;;  %v1465_v12 = vld [vmem:[%s2934_s5 + $0x10] sm:$0xff] (!%p238_p2)  ;;  %vm585_vm0 = vcmask (!%p238_p2), 130048   ;;  %vm576_vm1 = vcmask (!%p238_p2), 1040384   ;;  %vm587_vm2 = vcmask (!%p238_p2), 122880  }
   0x9   : > { %v470_v15 = vsub.s32 (!%p238_p2), 1, %v465_v14  ;;  %v466_v18 = vsub.s32 (!%p238_p2), 0, %v465_v14  ;;  %s1821_s10 = sshll.u32 (!%p238_p2), %s1958_s22, 5  ;;  %vm1551_vm3 = vcmask (!%p238_p2), 1041409   ;;  %vm1553_vm4 = vcmask (!%p238_p2), 1042434   ;;  %p299_p5 = scmp.lt.s32.totalorder (!%p238_p2), %s1958_s22, 1 }
   0xa   : > { %p2147_p4 = scmp.lt.s32.totalorder (!%p238_p2), %s1821_s10, 63  ;;  %vm1555_vm5 = vcmask (!%p238_p2), 1043459   ;;  %vm1557_vm6 = vcmask (!%p238_p2), 1044484   ;;  %vm1559_vm7 = vcmask (!%p238_p2), 1045509   ;;  %vm1561_vm8 = vcmask (!%p238_p2), 1046534  }
   0xb   : > { %537 = vperm.xlu1 (!%p238_p2), %1858, %v455_v3   ;;  %527 = vperm.xlu0 (!%p238_p2), %1857, %v453_v4   ;;  %vm1563_vm9 = vcmask (!%p238_p2), 1047559   ;;  %vm1622_vm10 = vcmask (!%p238_p2), 261120  }
   0xd   : > { %s2938_s25 = smov (!%p280_p3, %s1816_s25), 7  ;;  %s2940_s10 = smov (!%p2147_p4, %s1821_s10), 63 }
   0xe   : > { %s1820_s26 = sshll.u32 %s2938_s25, 1  ;;  %s1832_s30 = sshll.u32 %s2938_s25, 5 }
   0xf   : > { %547 = vperm.xlu1 %1858, %v457_v5   ;;  %542 = vperm.xlu0 %1857, %v456_v6   ;;  %s290_s29 = scalar_lea.vmem %s2930_s1, %s1820_s26  ;;  %s2005_s9 = scalar_lea.vmem %s2929_s0, %s1832_s30 }
  0x10   : > { %v321_v16 = vld [vmem:[%s290_s29 + $0x2] sm:$0x3]  ;;  %v320_v17 = vld [vmem:[%s290_s29] sm:$0x3]  ;;  %v309_v21 = vld [vmem:[%s2005_s9 + $0x28] sm:$0xff]  ;;  %s1833_s12 = sshll.u32 %s2940_s10, 5 }
  0x11   : > { %v479_v19 = vrot.slane %v321_v16, %v470_v15  ;;  %v471_v20 = vrot.slane %v320_v17, %v470_v15  ;;  %v305_v22 = vld [vmem:[%s2005_s9 + $0x8] sm:$0xff]  ;;  %v322_v23 = vld [vmem:[%s290_s29 + $0x4] sm:$0x3]  ;;  %v310_v24 = vld [vmem:[%s2005_s9 + $0x30] sm:$0x1]  ;;  %v475_v26 = vrot.slane %v321_v16, %v466_v18  ;;  %v467_v28 = vrot.slane %v320_v17, %v466_v18  ;;  %s2169_s15 = scalar_lea.vmem %s2931_s2, %s1833_s12  ;;  %s2942_s22 = smov (!%p299_p5, %s1958_s22), 1 }
  0x12   : > { %v323_v25 = vld [vmem:[%s290_s29 + $0x6] sm:$0x3]  ;;  %v311_v30 = vld [vmem:[%s2005_s9 + $0x38] sm:$0x1]  ;;  %v306_v31 = vld [vmem:[%s2005_s9 + $0x10] sm:$0x1]  ;;  %v483_v36 = vrot.slane %v322_v23, %v466_v18  ;;  %v487_v37 = vrot.slane %v322_v23, %v470_v15 }
  0x13   : > { %557 = vperm.xlu1 %1858, %v459_v7   ;;  %552 = vperm.xlu0 %1857, %v458_v8   ;;  %v509_v27 = vmul.f32 %v479_v19, %v309_v21  ;;  %v505_v29 = vmul.f32 %v471_v20, %v305_v22  ;;  %v307_v32 = vld [vmem:[%s2005_s9 + $0x18] sm:$0x1]  ;;  %v308_v33 = vld [vmem:[%s2005_s9 + $0x20] sm:$0xff]  ;;  %v314_v35 = vld [vmem:[%s2005_s9 + $0x50] sm:$0x1]  ;;  %v491_v43 = vrot.slane %v323_v25, %v466_v18  ;;  %s1834_s26 = sshll.u32 %s2942_s22, 6 }
  0x14   : > { %v304_v34 = vld [vmem:[%s2005_s9] sm:$0xff]  ;;  %v315_v40 = vld [vmem:[%s2005_s9 + $0x58] sm:$0x1]  ;;  %v313_v42 = vld [vmem:[%s2005_s9 + $0x48] sm:$0xff]  ;;  %v495_v44 = vrot.slane %v323_v25, %v470_v15  ;;  %v510_v45 = vmul.f32 %v475_v26, %v310_v24  ;;  %v511_v46 = vmul.f32 %v479_v19, %v311_v30  ;;  %v506_v47 = vmul.f32 %v467_v28, %v306_v31  ;;  %s303_s29 = scalar_lea.vmem %s2935_s6, %s1834_s26 }
  0x15   : > { %v312_v41 = vld [vmem:[%s2005_s9 + $0x40] sm:$0xff]  ;;  %v507_v48 = vmul.f32 %v471_v20, %v307_v32  ;;  %v318_v49 = vld [vmem:[%s2005_s9 + $0x70] sm:$0x1]  ;;  %v319_v50 = vld [vmem:[%s2005_s9 + $0x78] sm:$0x1]  ;;  %v508_v52 = vmul.f32 %v475_v26, %v308_v33  ;;  %v504_v54 = vmul.f32 %v467_v28, %v304_v34  ;;  %v514_v56 = vmul.f32 %v483_v36, %v314_v35 }
  0x16   : > { %v316_v51 = vld [vmem:[%s2005_s9 + $0x60] sm:$0xff]  ;;  %v515_v57 = vmul.f32 %v487_v37, %v315_v40  ;;  %v512_v58 = vmul.f32 %v483_v36, %v312_v41  ;;  %v513_v61 = vmul.f32 %v487_v37, %v313_v42  ;;  %v518_v62 = vmul.f32 %v491_v43, %v318_v49  ;;  %v317_v19 = vld [vmem:[%s2005_s9 + $0x68] sm:$0xff] }
  0x17   : > { %1474 = vperm.xlu1 %1858, %v1464_v9   ;;  %1469 = vperm.xlu0 %1857, %v1463_v10   ;;  %v519_v63 = vmul.f32 %v495_v44, %v319_v50  ;;  %v516_v0 = vmul.f32 %v491_v43, %v316_v51  ;;  %v517_v31 = vmul.f32 %v495_v44, %v317_v19 }
  0x1b   : > { %1484 = vperm.xlu1 %1858, %v1466_v11   ;;  %1479 = vperm.xlu0 %1857, %v1465_v12  }
  0x86   : > { %v533_v38 = vpop.permute.xlu1 %532  ;;  %v523_v39 = vpop.permute.xlu0 %522 }
  0x87   : > { %v2022_v53 = vadd.f32 %v533_v38, %v509_v27  ;;  %v2024_v55 = vadd.f32 %v523_v39, %v505_v29  ;;  %v2034_v5 = vadd.f32 %v533_v38, %v508_v52  ;;  %v2038_v7 = vadd.f32 %v523_v39, %v504_v54 }
  0x89   : > { %v604_v6 = vsel %vm585_vm0, %v2022_v53, -inf  ;;  %v586_v8 = vsel %vm585_vm0, %v2024_v55, -inf }
  0x8a   : > { %v538_v59 = vpop.permute.xlu1 %537  ;;  %v528_v60 = vpop.permute.xlu0 %527 }
  0x8b   : > { %v2026_v1 = vadd.f32 %v538_v59, %v510_v45  ;;  %v2028_v2 = vadd.f32 %v538_v59, %v511_v46  ;;  %v2030_v3 = vadd.f32 %v528_v60, %v506_v47  ;;  %v2032_v4 = vadd.f32 %v528_v60, %v507_v48 }
  0x8d   : > { %v596_v9 = vsel %vm576_vm1, %v2026_v1, -inf  ;;  %v605_v10 = vsel %vm587_vm2, %v2028_v2, -inf  ;;  %v577_v11 = vsel %vm576_vm1, %v2030_v3, -inf  ;;  %v588_v12 = vsel %vm587_vm2, %v2032_v4, -inf }
  0x8e   : > { %v597_v13 = vmax.f32 %v2034_v5, %v596_v9  ;;  %v606_v14 = vmax.f32 %v604_v6, %v605_v10  ;;  %v578_v15 = vmax.f32 %v2038_v7, %v577_v11  ;;  %v589_v16 = vmax.f32 %v586_v8, %v588_v12  ;;  %v548_v17 = vpop.permute.xlu1 %547  ;;  %v543_v18 = vpop.permute.xlu0 %542 }
  0x8f   : > { %v2053_v20 = vadd.f32 %v548_v17, %v514_v56  ;;  %v2055_v21 = vadd.f32 %v548_v17, %v515_v57  ;;  %v2057_v22 = vadd.f32 %v543_v18, %v512_v58  ;;  %v2059_v23 = vadd.f32 %v543_v18, %v513_v61 }
  0x90   : > { %v598_v24 = vrot.slane %v597_v13, 4  ;;  %v607_v25 = vrot.slane %v606_v14, 4  ;;  %v579_v26 = vrot.slane %v578_v15, 4  ;;  %v590_v27 = vrot.slane %v589_v16, 4 }
  0x91   : > { %v613_v28 = vsel %vm576_vm1, %v2053_v20, -inf  ;;  %v622_v29 = vsel %vm587_vm2, %v2055_v21, -inf  ;;  %v621_v30 = vsel %vm585_vm0, %v2059_v23, -inf }
  0x92   : > { %v599_v32 = vmax.f32 %v597_v13, %v598_v24  ;;  %v608_v33 = vmax.f32 %v606_v14, %v607_v25  ;;  %v580_v34 = vmax.f32 %v578_v15, %v579_v26  ;;  %v591_v35 = vmax.f32 %v589_v16, %v590_v27  ;;  %v558_v36 = vpop.permute.xlu1 %557  ;;  %v553_v46 = vpop.permute.xlu0 %552 }
  0x93   : > { %v614_v37 = vmax.f32 %v2057_v22, %v613_v28  ;;  %v623_v38 = vmax.f32 %v621_v30, %v622_v29  ;;  %v2068_v39 = vadd.f32 %v558_v36, %v518_v62  ;;  %v2070_v40 = vadd.f32 %v558_v36, %v519_v63 }
  0x94   : > { %v600_v41 = vrot.slane %v599_v32, 2  ;;  %v609_v42 = vrot.slane %v608_v33, 2  ;;  %v581_v43 = vrot.slane %v580_v34, 2  ;;  %v592_v45 = vrot.slane %v591_v35, 2 }
  0x95   : > { %v615_v47 = vrot.slane %v614_v37, 4  ;;  %v624_v48 = vrot.slane %v623_v38, 4  ;;  %v630_v44 = vsel %vm576_vm1, %v2068_v39, -inf  ;;  %v639_v49 = vsel %vm587_vm2, %v2070_v40, -inf }
  0x96   : > { %v601_v50 = vmax.f32 %v599_v32, %v600_v41  ;;  %v610_v51 = vmax.f32 %v608_v33, %v609_v42  ;;  %v582_v52 = vmax.f32 %v580_v34, %v581_v43  ;;  %v593_v54 = vmax.f32 %v591_v35, %v592_v45 }
  0x97   : > { %v616_v56 = vmax.f32 %v614_v37, %v615_v47  ;;  %v625_v57 = vmax.f32 %v623_v38, %v624_v48  ;;  %v2076_v58 = vadd.f32 %v553_v46, %v516_v0  ;;  %v2078_v59 = vadd.f32 %v553_v46, %v517_v31 }
  0x98   : > { %v602_v60 = vrot.slane %v601_v50, 1  ;;  %v611_v61 = vrot.slane %v610_v51, 1  ;;  %v583_v62 = vrot.slane %v582_v52, 1  ;;  %v594_v63 = vrot.slane %v593_v54, 1 }
  0x99   : > { %v617_v6 = vrot.slane %v616_v56, 2  ;;  %v626_v8 = vrot.slane %v625_v57, 2  ;;  %v631_v9 = vmax.f32 %v2076_v58, %v630_v44  ;;  %v638_v10 = vsel %vm585_vm0, %v2078_v59, -inf }
  0x9a   : > { %v603_v11 = vmax.f32 %v601_v50, %v602_v60  ;;  %v612_v12 = vmax.f32 %v610_v51, %v611_v61  ;;  %v584_v13 = vmax.f32 %v582_v52, %v583_v62  ;;  %v595_v14 = vmax.f32 %v593_v54, %v594_v63 }
  0x9b   : > { %v618_v15 = vmax.f32 %v616_v56, %v617_v6  ;;  %v627_v0 = vmax.f32 %v625_v57, %v626_v8  ;;  %v632_v16 = vrot.slane %v631_v9, 4  ;;  %v640_v17 = vmax.f32 %v638_v10, %v639_v49 }
  0x9c   : > { %v651_v18 = vsub.f32 %v2034_v5, %v603_v11  ;;  %v652_v19 = vsub.f32 %v2022_v53, %v612_v12  ;;  %v653_v24 = vsub.f32 %v2026_v1, %v603_v11  ;;  %v654_v25 = vsub.f32 %v2028_v2, %v612_v12 }
  0x9d   : > { %v647_v26 = vsub.f32 %v2038_v7, %v584_v13  ;;  %v648_v27 = vsub.f32 %v2024_v55, %v595_v14  ;;  %v649_v28 = vsub.f32 %v2030_v3, %v584_v13  ;;  %v650_v29 = vsub.f32 %v2032_v4, %v595_v14 }
  0x9e   : > { %v671_v30 = vmul.f32 1.442695, %v651_v18  ;;  %v673_v31 = vmul.f32 1.442695, %v652_v19  ;;  %v675_v32 = vmul.f32 1.442695, %v653_v24  ;;  %v633_v33 = vmax.f32 %v631_v9, %v632_v16 }
  0x9f   : > { %v677_v34 = vmul.f32 1.442695, %v654_v25  ;;  %v663_v5 = vmul.f32 1.442695, %v647_v26  ;;  %v665_v53 = vmul.f32 1.442695, %v648_v27 }
  0xa0   : > { %1859 = vpow2.f32 %v671_v30  ;;  %v619_v35 = vrot.slane %v618_v15, 1  ;;  %v628_v1 = vrot.slane %v627_v0, 1  ;;  %v634_v2 = vrot.slane %v633_v33, 2 }
  0xa1   : > { %1861 = vpow2.f32 %v673_v31  ;;  %v641_v36 = vrot.slane %v640_v17, 4  ;;  %v667_v7 = vmul.f32 1.442695, %v649_v28  ;;  %v669_v55 = vmul.f32 1.442695, %v650_v29 }
  0xa2   : > { %1863 = vpow2.f32 %v675_v32  ;;  %v620_v37 = vmax.f32 %v618_v15, %v619_v35  ;;  %v629_v3 = vmax.f32 %v627_v0, %v628_v1  ;;  %v635_v4 = vmax.f32 %v633_v33, %v634_v2 }
  0xa3   : > { %1865 = vpow2.f32 %v677_v34  ;;  %v642_v38 = vmax.f32 %v640_v17, %v641_v36 }
  0xa4   : > { %1867 = vpow2.f32 %v663_v5  ;;  %v655_v41 = vsub.f32 %v2057_v22, %v620_v37  ;;  %v657_v42 = vsub.f32 %v2053_v20, %v620_v37  ;;  %v656_v43 = vsub.f32 %v2059_v23, %v629_v3 }
  0xa5   : > { %1869 = vpow2.f32 %v665_v53  ;;  %v658_v45 = vsub.f32 %v2055_v21, %v629_v3  ;;  %v636_v46 = vrot.slane %v635_v4, 1  ;;  %v643_v44 = vrot.slane %v642_v38, 2 }
  0xa6   : > { %1871 = vpow2.f32 %v667_v7  ;;  %v679_v47 = vmul.f32 1.442695, %v655_v41  ;;  %v683_v48 = vmul.f32 1.442695, %v657_v42  ;;  %v681_v49 = vmul.f32 1.442695, %v656_v43 }
  0xa7   : > { %1873 = vpow2.f32 %v669_v55  ;;  %v685_v50 = vmul.f32 1.442695, %v658_v45  ;;  %v637_v51 = vmax.f32 %v635_v4, %v636_v46  ;;  %v644_v52 = vmax.f32 %v642_v38, %v643_v44 }
  0xa8   : > { %1875 = vpow2.f32 %v679_v47 }
  0xa9   : > { %1877 = vpow2.f32 %v681_v49  ;;  %v659_v22 = vsub.f32 %v2076_v58, %v637_v51  ;;  %v661_v20 = vsub.f32 %v2068_v39, %v637_v51  ;;  %v645_v21 = vrot.slane %v644_v52, 1 }
  0xaa   : > { %v2097_v54 = vpop.eup %1859  ;;  %1879 = vpow2.f32 %v683_v48 }
  0xab   : > { %v2099_v23 = vpop.eup %1861  ;;  %1881 = vpow2.f32 %v685_v50  ;;  %v687_v56 = vmul.f32 1.442695, %v659_v22  ;;  %v691_v57 = vmul.f32 1.442695, %v661_v20  ;;  %v646_v62 = vmax.f32 %v644_v52, %v645_v21 }
  0xac   : > { %v2101_v60 = vpop.eup %1863  ;;  %v720_v61 = vsel %vm585_vm0, %v2099_v23, 0.0 }
  0xad   : > { %v2105_v63 = vpop.eup %1865  ;;  %v712_v39 = vsel %vm576_vm1, %v2101_v60, 0.0  ;;  %1883 = vpow2.f32 %v687_v56  ;;  %v660_v9 = vsub.f32 %v2078_v59, %v646_v62  ;;  %v662_v10 = vsub.f32 %v2070_v40, %v646_v62 }
  0xae   : > { %v2109_v58 = vpop.eup %1867  ;;  %v713_v6 = vadd.f32 %v2097_v54, %v712_v39  ;;  %v721_v8 = vsel %vm587_vm2, %v2105_v63, 0.0  ;;  %1885 = vpow2.f32 %v691_v57 }
  0xaf   : > { %v2116_v11 = vpop.eup %1869  ;;  %v722_v12 = vadd.f32 %v721_v8, %v720_v61  ;;  %v689_v0 = vmul.f32 1.442695, %v660_v9  ;;  %v693_v16 = vmul.f32 1.442695, %v662_v10 }
  0xb0   : > { %v2118_v13 = vpop.eup %1871  ;;  %v714_v14 = vrot.slane %v713_v6, 4  ;;  %v703_v15 = vsel %vm585_vm0, %v2116_v11, 0.0 }
  0xb1   : > { %v2122_v17 = vpop.eup %1873  ;;  %v723_v18 = vrot.slane %v722_v12, 4  ;;  %v695_v59 = vsel %vm576_vm1, %v2118_v13, 0.0  ;;  %1887 = vpow2.f32 %v689_v0 }
  0xb2   : > { %v2126_v19 = vpop.eup %1875  ;;  %v715_v40 = vadd.f32 %v714_v14, %v713_v6  ;;  %v696_v24 = vadd.f32 %v2109_v58, %v695_v59  ;;  %v704_v25 = vsel %vm587_vm2, %v2122_v17, 0.0  ;;  %1889 = vpow2.f32 %v693_v16 }
  0xb3   : > { %v2131_v26 = vpop.eup %1877  ;;  %v724_v27 = vadd.f32 %v723_v18, %v722_v12  ;;  %v705_v28 = vadd.f32 %v704_v25, %v703_v15 }
  0xb4   : > { %v2133_v29 = vpop.eup %1879  ;;  %v716_v30 = vrot.slane %v715_v40, 2  ;;  %v697_v31 = vrot.slane %v696_v24, 4  ;;  %v737_v32 = vsel %vm585_vm0, %v2131_v26, 0.0 }
  0xb5   : > { %v2137_v33 = vpop.eup %1881  ;;  %v725_v34 = vrot.slane %v724_v27, 2  ;;  %v706_v5 = vrot.slane %v705_v28, 4  ;;  %v729_v53 = vsel %vm576_vm1, %v2133_v29, 0.0 }
  0xb6   : > { %v717_v35 = vadd.f32 %v716_v30, %v715_v40  ;;  %v698_v1 = vadd.f32 %v697_v31, %v696_v24  ;;  %v730_v2 = vadd.f32 %v2126_v19, %v729_v53  ;;  %v738_v36 = vsel %vm587_vm2, %v2137_v33, 0.0 }
  0xb7   : > { %v2145_v7 = vpop.eup %1883  ;;  %v726_v55 = vadd.f32 %v725_v34, %v724_v27  ;;  %v707_v37 = vadd.f32 %v706_v5, %v705_v28  ;;  %v739_v3 = vadd.f32 %v738_v36, %v737_v32  ;;  %v329_v34 = vld [vmem:[%s2169_s15 + $0x28] sm:$0xff]  ;;  %v328_v5 = vld [vmem:[%s2169_s15 + $0x20] sm:$0xff]  ;;  %v331_v36 = vld [vmem:[%s2169_s15 + $0x38] sm:$0x1] }
  0xb8   : > { %v718_v4 = vrot.slane %v717_v35, 1  ;;  %v699_v38 = vrot.slane %v698_v1, 2  ;;  %v731_v41 = vrot.slane %v730_v2, 4  ;;  %v2151_v42 = vpop.eup %1885 }
  0xb9   : > { %v727_v43 = vrot.slane %v726_v55, 1  ;;  %v708_v45 = vrot.slane %v707_v37, 2  ;;  %v740_v46 = vrot.slane %v739_v3, 4  ;;  %v746_v49 = vsel %vm576_vm1, %v2151_v42, 0.0 }
  0xba   : > { %v719_v47 = vadd.f32 %v718_v4, %v717_v35  ;;  %v700_v48 = vadd.f32 %v699_v38, %v698_v1  ;;  %v732_v44 = vadd.f32 %v731_v41, %v730_v2  ;;  %v747_v22 = vadd.f32 %v2145_v7, %v746_v49  ;;  %v361_v38 = vld [vmem:[%s2169_s15 + $0x128] sm:$0xff] }
  0xbb   : > { %v728_v50 = vadd.f32 %v727_v43, %v726_v55  ;;  %v709_v51 = vadd.f32 %v708_v45, %v707_v37  ;;  %v741_v52 = vadd.f32 %v740_v46, %v739_v3  ;;  %v2156_v20 = vpop.eup %1887  ;;  %v345_v55 = vld [vmem:[%s2169_s15 + $0xa8] sm:$0xff]  ;;  %v347_v37 = vld [vmem:[%s2169_s15 + $0xb8] sm:$0x1] }
  0xbc   : > { %1891 = vrcp.f32 %v719_v47  ;;  %v701_v21 = vrot.slane %v700_v48, 1  ;;  %v733_v56 = vrot.slane %v732_v44, 2  ;;  %v2160_v57 = vpop.eup %1889  ;;  %v748_v39 = vrot.slane %v747_v22, 4  ;;  %v377_v45 = vld [vmem:[%s2169_s15 + $0x1a8] sm:$0xff] }
  0xbd   : > { %1893 = vrcp.f32 %v728_v50  ;;  %v710_v61 = vrot.slane %v709_v51, 1  ;;  %v742_v62 = vrot.slane %v741_v52, 2  ;;  %v754_v9 = vsel %vm585_vm0, %v2156_v20, 0.0 }
  0xbe   : > { %v702_v6 = vadd.f32 %v701_v21, %v700_v48  ;;  %v734_v8 = vadd.f32 %v733_v56, %v732_v44  ;;  %v755_v10 = vsel %vm587_vm2, %v2160_v57, 0.0  ;;  %v749_v15 = vadd.f32 %v748_v39, %v747_v22  ;;  %v379_v48 = vld [vmem:[%s2169_s15 + $0x1b8] sm:$0x1]  ;;  %v341_v56 = vld [vmem:[%s2169_s15 + $0x88] sm:$0xff] }
  0xbf   : > { %v711_v12 = vadd.f32 %v710_v61, %v709_v51  ;;  %v743_v14 = vadd.f32 %v742_v62, %v741_v52  ;;  %v756_v0 = vadd.f32 %v755_v10, %v754_v9  ;;  %v327_v21 = vld [vmem:[%s2169_s15 + $0x18] sm:$0x1]  ;;  %v373_v10 = vld [vmem:[%s2169_s15 + $0x188] sm:$0xff] }
  0xc0   : > { %1895 = vrcp.f32 %v702_v6  ;;  %v735_v16 = vrot.slane %v734_v8, 1  ;;  %v750_v59 = vrot.slane %v749_v15, 2  ;;  %v343_v61 = vld [vmem:[%s2169_s15 + $0x98] sm:$0x1] }
  0xc1   : > { %1897 = vrcp.f32 %v711_v12  ;;  %v744_v18 = vrot.slane %v743_v14, 1  ;;  %v757_v40 = vrot.slane %v756_v0, 4  ;;  %v375_v12 = vld [vmem:[%s2169_s15 + $0x198] sm:$0x1] }
  0xc2   : > { %v736_v24 = vadd.f32 %v735_v16, %v734_v8  ;;  %v751_v27 = vadd.f32 %v750_v59, %v749_v15  ;;  %v359_v8 = vld [vmem:[%s2169_s15 + $0x118] sm:$0x1] }
  0xc3   : > { %v745_v25 = vadd.f32 %v744_v18, %v743_v14  ;;  %v758_v28 = vadd.f32 %v757_v40, %v756_v0  ;;  %v333_v0 = vld [vmem:[%s2169_s15 + $0x48] sm:$0xff]  ;;  %v335_v16 = vld [vmem:[%s2169_s15 + $0x58] sm:$0x1] }
  0xc4   : > { %1899 = vrcp.f32 %v736_v24  ;;  %v752_v30 = vrot.slane %v751_v27, 1 }
  0xc5   : > { %1901 = vrcp.f32 %v745_v25  ;;  %v759_v31 = vrot.slane %v758_v28, 2 }
  0xc6   : > { %v1892_v32 = vpop.eup %1891  ;;  %v753_v1 = vadd.f32 %v752_v30, %v751_v27  ;;  %v349_v30 = vld [vmem:[%s2169_s15 + $0xc8] sm:$0xff] }
  0xc7   : > { %v1894_v53 = vpop.eup %1893  ;;  %v2174_v35 = vmul.f32 %v1892_v32, %v2097_v54  ;;  %v760_v2 = vadd.f32 %v759_v31, %v758_v28  ;;  %v2187_v41 = vmul.f32 %v1892_v32, %v2101_v60  ;;  %v363_v54 = vld [vmem:[%s2169_s15 + $0x138] sm:$0x1]  ;;  %v365_v32 = vld [vmem:[%s2169_s15 + $0x148] sm:$0xff] }
  0xc8   : > { %v2180_v3 = vmul.f32 %v1894_v53, %v2099_v23  ;;  %v2183_v4 = vmul.f32 %v1894_v53, %v2105_v63  ;;  %1903 = vrcp.f32 %v753_v1  ;;  %v325_v23 = vld [vmem:[%s2169_s15 + $0x8] sm:$0xff]  ;;  %v351_v31 = vld [vmem:[%s2169_s15 + $0xd8] sm:$0x1] }
  0xc9   : > { %v761_v43 = vrot.slane %v760_v2, 1  ;;  %v2192_v46 = vmul.f32 %v2174_v35, %v328_v5 }
  0xca   : > { %v1896_v47 = vpop.eup %1895  ;;  %v792_v63 = vmul.f32 %v2180_v3, %v329_v34  ;;  %v794_v60 = vmul.f32 %v2183_v4, %v331_v36  ;;  %v2199_v44 = vmul.f32 %v2180_v3, %v345_v55  ;;  %v2202_v49 = vmul.f32 %v2183_v4, %v347_v37  ;;  %v383_v36 = vld [vmem:[%s2169_s15 + $0x1d8] sm:$0x1] }
  0xcb   : > { %v1898_v50 = vpop.eup %1897  ;;  %v2205_v51 = vmul.f32 %v1896_v47, %v2109_v58  ;;  %v2208_v52 = vmul.f32 %v1896_v47, %v2118_v13  ;;  %v762_v22 = vadd.f32 %v761_v43, %v760_v2  ;;  %v2214_v62 = vmul.f32 %v2180_v3, %v361_v38  ;;  %v357_v58 = vld [vmem:[%s2169_s15 + $0x108] sm:$0xff]  ;;  %v367_v2 = vld [vmem:[%s2169_s15 + $0x158] sm:$0x1] }
  0xcc   : > { %v2217_v39 = vmul.f32 %v1898_v50, %v2116_v11  ;;  %v2220_v6 = vmul.f32 %v1898_v50, %v2122_v17  ;;  %v2225_v13 = vmul.f32 %v2183_v4, %v363_v54  ;;  %v2228_v9 = vmul.f32 %v2180_v3, %v377_v45 }
  0xcd   : > { %1905 = vrcp.f32 %v762_v22  ;;  %v2233_v11 = vmul.f32 %v2183_v4, %v379_v48  ;;  %v940_v17 = vsel %vm585_vm0, %v792_v63, 0.0  ;;  %v941_v14 = vsel %vm587_vm2, %v794_v60, 0.0 }
  0xce   : > { %v1900_v15 = vpop.eup %1899  ;;  %v788_v18 = vmul.f32 %v2217_v39, %v325_v23  ;;  %v790_v59 = vmul.f32 %v2220_v6, %v327_v21  ;;  %v804_v40 = vmul.f32 %v2217_v39, %v341_v56  ;;  %v806_v24 = vmul.f32 %v2220_v6, %v343_v61 }
  0xcf   : > { %v1902_v25 = vpop.eup %1901  ;;  %v2244_v27 = vmul.f32 %v1900_v15, %v2126_v19  ;;  %v2247_v28 = vmul.f32 %v1900_v15, %v2133_v29  ;;  %v820_v34 = vmul.f32 %v2217_v39, %v357_v58  ;;  %v2254_v5 = vmul.f32 %v2220_v6, %v359_v8  ;;  %v381_v19 = vld [vmem:[%s2169_s15 + $0x1c8] sm:$0xff] }
  0xd0   : > { %v2257_v53 = vmul.f32 %v1902_v25, %v2131_v26  ;;  %v2260_v1 = vmul.f32 %v1902_v25, %v2137_v33  ;;  %v2266_v29 = vmul.f32 %v2217_v39, %v373_v10  ;;  %v2269_v55 = vmul.f32 %v2220_v6, %v375_v12 }
  0xd1   : > { %v923_v37 = vsel %vm585_vm0, %v788_v18, 0.0  ;;  %v924_v38 = vsel %vm587_vm2, %v790_v59, 0.0  ;;  %v942_v43 = vadd.f32 %v941_v14, %v940_v17  ;;  %v991_v26 = vsel %vm585_vm0, %v804_v40, 0.0  ;;  %v337_v17 = vld [vmem:[%s2169_s15 + $0x68] sm:$0xff]  ;;  %v355_v14 = vld [vmem:[%s2169_s15 + $0xf8] sm:$0x1] }
  0xd2   : > { %v796_v54 = vmul.f32 %v2257_v53, %v333_v0  ;;  %v798_v33 = vmul.f32 %v2260_v1, %v335_v16  ;;  %v812_v45 = vmul.f32 %v2257_v53, %v349_v30  ;;  %v814_v47 = vmul.f32 %v2260_v1, %v351_v31  ;;  %v1904_v23 = vpop.eup %1903  ;;  %v353_v59 = vld [vmem:[%s2169_s15 + $0xe8] sm:$0xff] }
  0xd3   : > { %v2279_v48 = vmul.f32 %v2257_v53, %v365_v32  ;;  %v2282_v63 = vmul.f32 %v2260_v1, %v367_v2  ;;  %v2285_v60 = vmul.f32 %v2257_v53, %v381_v19  ;;  %v2288_v50 = vmul.f32 %v2260_v1, %v383_v36  ;;  %v369_v40 = vld [vmem:[%s2169_s15 + $0x168] sm:$0xff]  ;;  %v371_v2 = vld [vmem:[%s2169_s15 + $0x178] sm:$0x1] }
  0xd4   : > { %v2291_v22 = vmul.f32 %v1904_v23, %v2145_v7  ;;  %v2294_v21 = vmul.f32 %v1904_v23, %v2151_v42  ;;  %v925_v56 = vadd.f32 %v924_v38, %v923_v37  ;;  %v943_v61 = vrot.slane %v942_v43, 4  ;;  %v339_v7 = vld [vmem:[%s2169_s15 + $0x78] sm:$0x1]  ;;  %v385_v19 = vld [vmem:[%s2169_s15 + $0x1e8] sm:$0xff] }
  0xd5   : > { %v957_v58 = vsel %vm585_vm0, %v796_v54, 0.0  ;;  %v958_v8 = vsel %vm587_vm2, %v798_v33, 0.0  ;;  %v992_v10 = vsel %vm587_vm2, %v806_v24, 0.0  ;;  %v1008_v12 = vsel %vm585_vm0, %v2199_v44, 0.0  ;;  %v387_v36 = vld [vmem:[%s2169_s15 + $0x1f8] sm:$0x1] }
  0xd6   : > { %v926_v42 = vrot.slane %v925_v56, 4  ;;  %v944_v15 = vadd.f32 %v943_v61, %v942_v43  ;;  %v959_v0 = vadd.f32 %v958_v8, %v957_v58  ;;  %v993_v16 = vadd.f32 %v992_v10, %v991_v26 }
  0xd7   : > { %v1906_v18 = vpop.eup %1905  ;;  %v1009_v25 = vsel %vm587_vm2, %v2202_v49, 0.0  ;;  %v1025_v24 = vsel %vm585_vm0, %v812_v45, 0.0  ;;  %v1026_v44 = vsel %vm587_vm2, %v814_v47, 0.0  ;;  %v1059_v30 = vsel %vm585_vm0, %v820_v34, 0.0 }
  0xd8   : > { %v2312_v31 = vmul.f32 %v1906_v18, %v2156_v20  ;;  %v2315_v32 = vmul.f32 %v1906_v18, %v2160_v57  ;;  %v927_v37 = vadd.f32 %v926_v42, %v925_v56  ;;  %v945_v38 = vrot.slane %v944_v15, 2 }
  0xd9   : > { %v960_v43 = vrot.slane %v959_v0, 4  ;;  %v994_v26 = vrot.slane %v993_v16, 4  ;;  %v1010_v49 = vadd.f32 %v1009_v25, %v1008_v12  ;;  %v1027_v54 = vadd.f32 %v1026_v44, %v1025_v24 }
  0xda   : > { %v800_v33 = vmul.f32 %v2312_v31, %v337_v17  ;;  %v802_v45 = vmul.f32 %v2315_v32, %v339_v7  ;;  %v816_v34 = vmul.f32 %v2312_v31, %v353_v59  ;;  %v818_v20 = vmul.f32 %v2315_v32, %v355_v14 }
  0xdb   : > { %v832_v57 = vmul.f32 %v2312_v31, %v369_v40  ;;  %v834_v47 = vmul.f32 %v2315_v32, %v371_v2  ;;  %v2327_v23 = vmul.f32 %v2312_v31, %v385_v19  ;;  %v2330_v56 = vmul.f32 %v2315_v32, %v387_v36 }
  0xdc   : > { %v928_v61 = vrot.slane %v927_v37, 2  ;;  %v946_v58 = vadd.f32 %v945_v38, %v944_v15  ;;  %v961_v8 = vadd.f32 %v960_v43, %v959_v0  ;;  %v974_v10 = vsel %vm585_vm0, %v800_v33, 0.0 }
  0xdd   : > { %v975_v12 = vsel %vm587_vm2, %v802_v45, 0.0  ;;  %v995_v17 = vadd.f32 %v994_v26, %v993_v16  ;;  %v1011_v7 = vrot.slane %v1010_v49, 4  ;;  %v1028_v14 = vrot.slane %v1027_v54, 4 }
  0xde   : > { %v929_v42 = vadd.f32 %v928_v61, %v927_v37  ;;  %v947_v18 = vrot.slane %v946_v58, 1  ;;  %v962_v59 = vrot.slane %v961_v8, 2  ;;  %v976_v40 = vadd.f32 %v975_v12, %v974_v10 }
  0xdf   : > { %v996_v25 = vrot.slane %v995_v17, 2  ;;  %v1012_v24 = vadd.f32 %v1011_v7, %v1010_v49  ;;  %v1029_v44 = vadd.f32 %v1028_v14, %v1027_v54  ;;  %v1042_v2 = vsel %vm585_vm0, %v816_v34, 0.0 }
  0xe0   : > { %v930_v19 = vrot.slane %v929_v42, 1  ;;  %v2335_v36 = vadd.f32 %v947_v18, %v946_v58  ;;  %v963_v15 = vadd.f32 %v962_v59, %v961_v8  ;;  %v977_v0 = vrot.slane %v976_v40, 4 }
  0xe1   : > { %v997_v38 = vadd.f32 %v996_v25, %v995_v17  ;;  %v1013_v43 = vrot.slane %v1012_v24, 2  ;;  %v1030_v33 = vrot.slane %v1029_v44, 2  ;;  %v1043_v16 = vsel %vm587_vm2, %v818_v20, 0.0 }
  0xe2   : > { %v2338_v26 = vadd.f32 %v930_v19, %v929_v42  ;;  %v964_v37 = vrot.slane %v963_v15, 1  ;;  %v978_v45 = vadd.f32 %v977_v0, %v976_v40  ;;  %v1044_v61 = vadd.f32 %v1043_v16, %v1042_v2 }
  0xe3   : > { %v998_v10 = vrot.slane %v997_v38, 1  ;;  %v1014_v49 = vadd.f32 %v1013_v43, %v1012_v24  ;;  %v1031_v54 = vadd.f32 %v1030_v33, %v1029_v44  ;;  %v1060_v34 = vsel %vm587_vm2, %v2254_v5, 0.0 }
  0xe4   : > { %v2342_v58 = vadd.f32 %v964_v37, %v963_v15  ;;  %v979_v8 = vrot.slane %v978_v45, 2  ;;  %v1045_v12 = vrot.slane %v1044_v61, 4  ;;  %v1061_v17 = vadd.f32 %v1060_v34, %v1059_v30 }
  0xe5   : > { %v2344_v7 = vadd.f32 %v998_v10, %v997_v38  ;;  %v1015_v14 = vrot.slane %v1014_v49, 1  ;;  %v1032_v20 = vrot.slane %v1031_v54, 1  ;;  %v1076_v42 = vsel %vm585_vm0, %v2214_v62, 0.0 }
  0xe6   : > { %v980_v18 = vadd.f32 %v979_v8, %v978_v45  ;;  %v1046_v59 = vadd.f32 %v1045_v12, %v1044_v61  ;;  %v1062_v40 = vrot.slane %v1061_v17, 4  ;;  %v1077_v25 = vsel %vm587_vm2, %v2225_v13, 0.0 }
  0xe7   : > { %v2350_v24 = vadd.f32 %v1015_v14, %v1014_v49  ;;  %v2352_v5 = vadd.f32 %v1032_v20, %v1031_v54  ;;  %v1078_v44 = vadd.f32 %v1077_v25, %v1076_v42  ;;  %v1093_v30 = vsel %vm585_vm0, %v2279_v48, 0.0 }
  0xe8   : > { %v981_v2 = vrot.slane %v980_v18, 1  ;;  %v1047_v19 = vrot.slane %v1046_v59, 2  ;;  %v1063_v15 = vadd.f32 %v1062_v40, %v1061_v17  ;;  %v1094_v62 = vsel %vm587_vm2, %v2282_v63, 0.0 }
  0xe9   : > { %v1079_v0 = vrot.slane %v1078_v44, 4  ;;  %v1095_v38 = vadd.f32 %v1094_v62, %v1093_v30  ;;  %v1110_v43 = vsel %vm585_vm0, %v832_v57, 0.0  ;;  %v1111_v13 = vsel %vm587_vm2, %v834_v47, 0.0 }
  0xea   : > { %v982_v33 = vadd.f32 %v981_v2, %v980_v18  ;;  %v1048_v16 = vadd.f32 %v1047_v19, %v1046_v59  ;;  %v1064_v37 = vrot.slane %v1063_v15, 2  ;;  %v1112_v45 = vadd.f32 %v1111_v13, %v1110_v43 }
  0xeb   : > { %v1080_v61 = vadd.f32 %v1079_v0, %v1078_v44  ;;  %v1096_v48 = vrot.slane %v1095_v38, 4  ;;  %v1127_v10 = vsel %vm585_vm0, %v2266_v29, 0.0  ;;  %v1128_v63 = vsel %vm587_vm2, %v2269_v55, 0.0 }
  0xec   : > { %v1049_v49 = vrot.slane %v1048_v16, 1  ;;  %v1065_v54 = vadd.f32 %v1064_v37, %v1063_v15  ;;  %v1113_v57 = vrot.slane %v1112_v45, 4  ;;  %v1129_v34 = vadd.f32 %v1128_v63, %v1127_v10 }
  0xed   : > { %v1081_v47 = vrot.slane %v1080_v61, 2  ;;  %v1097_v8 = vadd.f32 %v1096_v48, %v1095_v38  ;;  %v1144_v12 = vsel %vm585_vm0, %v2228_v9, 0.0  ;;  %v1145_v17 = vsel %vm587_vm2, %v2233_v11, 0.0 }
  0xee   : > { %v1050_v14 = vadd.f32 %v1049_v49, %v1048_v16  ;;  %v1066_v29 = vrot.slane %v1065_v54, 1  ;;  %v1114_v20 = vadd.f32 %v1113_v57, %v1112_v45  ;;  %v1130_v42 = vrot.slane %v1129_v34, 4 }
  0xef   : > { %v1082_v55 = vadd.f32 %v1081_v47, %v1080_v61  ;;  %v1098_v18 = vrot.slane %v1097_v8, 2  ;;  %v1146_v59 = vadd.f32 %v1145_v17, %v1144_v12  ;;  %v1161_v40 = vsel %vm585_vm0, %v2285_v60, 0.0  ;;  %v330_v12 = vld [vmem:[%s2169_s15 + $0x30] sm:$0x1] }
  0xf0   : > { %v1067_v25 = vadd.f32 %v1066_v29, %v1065_v54  ;;  %v1115_v44 = vrot.slane %v1114_v20, 2  ;;  %v1131_v30 = vadd.f32 %v1130_v42, %v1129_v34  ;;  %v1162_v9 = vsel %vm587_vm2, %v2288_v50, 0.0  ;;  %v326_v42 = vld [vmem:[%s2169_s15 + $0x10] sm:$0x1] }
  0xf1   : > { %v1083_v11 = vrot.slane %v1082_v55, 1  ;;  %v1099_v2 = vadd.f32 %v1098_v18, %v1097_v8  ;;  %v1147_v19 = vrot.slane %v1146_v59, 4  ;;  %v1163_v15 = vadd.f32 %v1162_v9, %v1161_v40  ;;  %v332_v40 = vld [vmem:[%s2169_s15 + $0x40] sm:$0xff] }
  0xf2   : > { %v1116_v62 = vadd.f32 %v1115_v44, %v1114_v20  ;;  %v1132_v0 = vrot.slane %v1131_v30, 2  ;;  %v1178_v38 = vsel %vm585_vm0, %v2327_v23, 0.0  ;;  %v1179_v43 = vsel %vm587_vm2, %v2330_v56, 0.0  ;;  %v324_v20 = vld [vmem:[%s2169_s15] sm:$0xff] }
  0xf3   : > { %v1084_v60 = vadd.f32 %v1083_v11, %v1082_v55  ;;  %v1100_v13 = vrot.slane %v1099_v2, 1  ;;  %v1148_v16 = vadd.f32 %v1147_v19, %v1146_v59  ;;  %v1164_v37 = vrot.slane %v1163_v15, 4  ;;  %v336_v44 = vld [vmem:[%s2169_s15 + $0x60] sm:$0xff]  ;;  %v338_v11 = vld [vmem:[%s2169_s15 + $0x70] sm:$0x1] }
  0xf4   : > { %v1117_v45 = vrot.slane %v1116_v62, 1  ;;  %v1133_v61 = vadd.f32 %v1132_v0, %v1131_v30  ;;  %v1180_v50 = vadd.f32 %v1179_v43, %v1178_v38  ;;  %v1565_v48 = vsel %vm1551_vm3, %v2335_v36, %v2338_v26  ;;  %v342_v19 = vld [vmem:[%s2169_s15 + $0x90] sm:$0x1]  ;;  %v344_v0 = vld [vmem:[%s2169_s15 + $0xa0] sm:$0xff] }
  0xf5   : > { %v1101_v10 = vadd.f32 %v1100_v13, %v1099_v2  ;;  %v1149_v63 = vrot.slane %v1148_v16, 2  ;;  %v1165_v49 = vadd.f32 %v1164_v37, %v1163_v15  ;;  %v1566_v23 = vsel %vm1553_vm4, %v2342_v58, %v1565_v48  ;;  %v340_v2 = vld [vmem:[%s2169_s15 + $0x80] sm:$0xff]  ;;  %v346_v38 = vld [vmem:[%s2169_s15 + $0xb0] sm:$0x1] }
  0xf6   : > { %v1118_v56 = vadd.f32 %v1117_v45, %v1116_v62  ;;  %v1134_v54 = vrot.slane %v1133_v61, 1  ;;  %v1181_v57 = vrot.slane %v1180_v50, 4  ;;  %v1567_v34 = vsel %vm1555_vm5, %v982_v33, %v1566_v23  ;;  %v356_v43 = vld [vmem:[%s2169_s15 + $0x100] sm:$0xff]  ;;  %v350_v37 = vld [vmem:[%s2169_s15 + $0xd0] sm:$0x1] }
  0xf7   : > { %v1150_v47 = vadd.f32 %v1149_v63, %v1148_v16  ;;  %v1166_v8 = vrot.slane %v1165_v49, 2  ;;  %v1568_v36 = vsel %vm1557_vm6, %v2344_v7, %v1567_v34  ;;  %v1579_v26 = vsel %vm1551_vm3, %v1084_v60, %v1067_v25  ;;  %v334_v25 = vld [vmem:[%s2169_s15 + $0x50] sm:$0x1]  ;;  %v348_v16 = vld [vmem:[%s2169_s15 + $0xc0] sm:$0xff] }
  0xf8   : > { %v1135_v17 = vadd.f32 %v1134_v54, %v1133_v61  ;;  %v1182_v29 = vadd.f32 %v1181_v57, %v1180_v50  ;;  %v1569_v58 = vsel %vm1559_vm7, %v2350_v24, %v1568_v36  ;;  %v1580_v33 = vsel %vm1553_vm4, %v1101_v10, %v1579_v26  ;;  %v352_v45 = vld [vmem:[%s2169_s15 + $0xe0] sm:$0xff]  ;;  %v358_v23 = vld [vmem:[%s2169_s15 + $0x110] sm:$0x1] }
  0xf9   : > { %v1151_v55 = vrot.slane %v1150_v47, 1  ;;  %v1167_v18 = vadd.f32 %v1166_v8, %v1165_v49  ;;  %v1570_v7 = vsel %vm1561_vm8, %v2352_v5, %v1569_v58  ;;  %v1581_v59 = vsel %vm1555_vm5, %v1118_v56, %v1580_v33  ;;  %v354_v49 = vld [vmem:[%s2169_s15 + $0xf0] sm:$0x1]  ;;  %v360_v56 = vld [vmem:[%s2169_s15 + $0x120] sm:$0xff] }
  0xfa   : > { %v1183_v24 = vrot.slane %v1182_v29, 2  ;;  %v1571_v30 = vsel %vm1563_vm9, %v1050_v14, %v1570_v7  ;;  %v1582_v9 = vsel %vm1557_vm6, %v1135_v17, %v1581_v59  ;;  %v2403_v15 = vmul.f32 %v2187_v41, %v330_v12  ;;  %v364_v8 = vld [vmem:[%s2169_s15 + $0x140] sm:$0xff]  ;;  %v366_v36 = vld [vmem:[%s2169_s15 + $0x150] sm:$0x1] }
  0xfb   : > { %v1152_v5 = vadd.f32 %v1151_v55, %v1150_v47  ;;  %v1168_v62 = vrot.slane %v1167_v18, 1  ;;  %v787_v60 = vmul.f32 %v2205_v51, %v324_v20  ;;  %v789_v14 = vmul.f32 %v2208_v52, %v326_v42  ;;  %v362_v47 = vld [vmem:[%s2169_s15 + $0x130] sm:$0x1]  ;;  %v368_v58 = vld [vmem:[%s2169_s15 + $0x160] sm:$0xff] }
  0xfc   : > { %v1184_v13 = vadd.f32 %v1183_v24, %v1182_v29  ;;  %v795_v61 = vmul.f32 %v2244_v27, %v332_v40  ;;  %v797_v50 = vmul.f32 %v2247_v28, %v334_v25  ;;  %v799_v48 = vmul.f32 %v2291_v22, %v336_v44  ;;  %v370_v33 = vld [vmem:[%s2169_s15 + $0x170] sm:$0x1]  ;;  %v372_v20 = vld [vmem:[%s2169_s15 + $0x180] sm:$0xff] }
  0xfd   : > { %v1169_v10 = vadd.f32 %v1168_v62, %v1167_v18  ;;  %v1583_v63 = vsel %vm1559_vm7, %v1152_v5, %v1582_v9  ;;  %v801_v54 = vmul.f32 %v2294_v21, %v338_v11  ;;  %v803_v57 = vmul.f32 %v2205_v51, %v340_v2  ;;  %v374_v59 = vld [vmem:[%s2169_s15 + $0x190] sm:$0x1]  ;;  %v376_v40 = vld [vmem:[%s2169_s15 + $0x1a0] sm:$0xff] }
  0xfe   : > { %v1185_v34 = vrot.slane %v1184_v13, 1  ;;  %v805_v26 = vmul.f32 %v2208_v52, %v342_v19  ;;  %v807_v12 = vmul.f32 %v2174_v35, %v344_v0  ;;  %v809_v17 = vmul.f32 %v2187_v41, %v346_v38  ;;  %v378_v25 = vld [vmem:[%s2169_s15 + $0x1b0] sm:$0x1]  ;;  %v380_v11 = vld [vmem:[%s2169_s15 + $0x1c0] sm:$0xff] }
  0xff   : > { %v1584_v29 = vsel %vm1561_vm8, %v1169_v10, %v1583_v63  ;;  %v811_v42 = vmul.f32 %v2244_v27, %v348_v16  ;;  %v813_v55 = vmul.f32 %v2247_v28, %v350_v37  ;;  %v815_v18 = vmul.f32 %v2291_v22, %v352_v45  ;;  %v382_v2 = vld [vmem:[%s2169_s15 + $0x1d0] sm:$0x1]  ;;  %v384_v19 = vld [vmem:[%s2169_s15 + $0x1e0] sm:$0xff] }
 0x100   : > { %v1186_v7 = vadd.f32 %v1185_v34, %v1184_v13  ;;  %v817_v44 = vmul.f32 %v2294_v21, %v354_v49  ;;  %v2440_v24 = vmul.f32 %v2205_v51, %v356_v43  ;;  %v2443_v9 = vmul.f32 %v2208_v52, %v358_v23 }
 0x101   : > { %v2449_v5 = vmul.f32 %v2174_v35, %v360_v56  ;;  %v2452_v62 = vmul.f32 %v2187_v41, %v362_v47  ;;  %v2455_v0 = vmul.f32 %v2244_v27, %v364_v8  ;;  %v2458_v38 = vmul.f32 %v2247_v28, %v366_v36 }
 0x102   : > { %v1585_v43 = vsel %vm1563_vm9, %v1186_v7, %v1584_v29  ;;  %v2462_v13 = vmul.f32 %v2291_v22, %v368_v58  ;;  %v2465_v16 = vmul.f32 %v2294_v21, %v370_v33  ;;  %v2468_v37 = vmul.f32 %v2205_v51, %v372_v20 }
 0x103   : > { %v1835_v45 = vpack.c.bf16 %v1585_v43, %v1571_v30  ;;  %v2471_v10 = vmul.f32 %v2208_v52, %v374_v59  ;;  %v2474_v63 = vmul.f32 %v2174_v35, %v376_v40  ;;  %v2477_v49 = vmul.f32 %v2187_v41, %v378_v25 }
 0x104   : > { %v2480_v23 = vmul.f32 %v2244_v27, %v380_v11  ;;  %v2483_v56 = vmul.f32 %v2247_v28, %v382_v2  ;;  %v2486_v34 = vmul.f32 %v2291_v22, %v384_v19  ;;  %v915_v30 = vsel %vm576_vm1, %v789_v14, 0.0 }
 0x105   : > { %1836 = vmatprep.subr.bf16.mxu0 %v1835_v45  ;;  %1843 = vmatprep.subr.bf16.mxu1 %v1835_v45  ;;  %v916_v47 = vadd.f32 %v915_v30, %v787_v60  ;;  %v932_v8 = vsel %vm576_vm1, %v2403_v15, 0.0  ;;  %v949_v36 = vsel %vm576_vm1, %v797_v50, 0.0  ;;  %v966_v29 = vsel %vm576_vm1, %v801_v54, 0.0 }
 0x106   : > { %v933_v58 = vadd.f32 %v932_v8, %v2192_v46  ;;  %v950_v33 = vadd.f32 %v949_v36, %v795_v61  ;;  %v967_v20 = vadd.f32 %v966_v29, %v799_v48  ;;  %v983_v7 = vsel %vm576_vm1, %v805_v26, 0.0 }
 0x107   : > { %v917_v59 = vrot.slane %v916_v47, 4  ;;  %v984_v40 = vadd.f32 %v983_v7, %v803_v57  ;;  %v1000_v14 = vsel %vm576_vm1, %v809_v17, 0.0  ;;  %v1017_v25 = vsel %vm576_vm1, %v813_v55, 0.0 }
 0x108   : > { %v934_v60 = vrot.slane %v933_v58, 4  ;;  %v951_v11 = vrot.slane %v950_v33, 4  ;;  %v968_v2 = vrot.slane %v967_v20, 4  ;;  %v1001_v15 = vadd.f32 %v1000_v14, %v807_v12 }
 0x109   : > { %v918_v19 = vadd.f32 %v917_v59, %v916_v47  ;;  %v985_v50 = vrot.slane %v984_v40, 4  ;;  %v1018_v43 = vadd.f32 %v1017_v25, %v811_v42  ;;  %v1034_v54 = vsel %vm576_vm1, %v817_v44, 0.0  ;;  %v386_v42 = vld [vmem:[%s2169_s15 + $0x1f0] sm:$0x1] }
 0x10a   : > { %v935_v46 = vadd.f32 %v934_v60, %v933_v58  ;;  %v952_v61 = vadd.f32 %v951_v11, %v950_v33  ;;  %v969_v48 = vadd.f32 %v968_v2, %v967_v20  ;;  %v1002_v26 = vrot.slane %v1001_v15, 4 }
 0x10b   : > { %v919_v45 = vrot.slane %v918_v19, 2  ;;  %v986_v57 = vadd.f32 %v985_v50, %v984_v40  ;;  %v1019_v30 = vrot.slane %v1018_v43, 4  ;;  %v1035_v17 = vadd.f32 %v1034_v54, %v815_v18 }
 0x10c   : > { %v936_v8 = vrot.slane %v935_v46, 2  ;;  %v953_v55 = vrot.slane %v952_v61, 2  ;;  %v970_v36 = vrot.slane %v969_v48, 2  ;;  %v1003_v29 = vadd.f32 %v1002_v26, %v1001_v15 }
 0x10d   : > { %v920_v7 = vadd.f32 %v919_v45, %v918_v19  ;;  %v987_v12 = vrot.slane %v986_v57, 2  ;;  %v1020_v47 = vadd.f32 %v1019_v30, %v1018_v43  ;;  %v1036_v59 = vrot.slane %v1035_v17, 4 }
 0x10e   : > { %v937_v14 = vadd.f32 %v936_v8, %v935_v46  ;;  %v954_v44 = vadd.f32 %v953_v55, %v952_v61  ;;  %v971_v58 = vadd.f32 %v970_v36, %v969_v48  ;;  %v1004_v25 = vrot.slane %v1003_v29, 2 }
 0x10f   : > { %v921_v33 = vrot.slane %v920_v7, 1  ;;  %v988_v20 = vadd.f32 %v987_v12, %v986_v57  ;;  %v1021_v60 = vrot.slane %v1020_v47, 2  ;;  %v1037_v11 = vadd.f32 %v1036_v59, %v1035_v17 }
 0x110   : > { %v938_v40 = vrot.slane %v937_v14, 1  ;;  %v955_v2 = vrot.slane %v954_v44, 1  ;;  %v972_v18 = vrot.slane %v971_v58, 1  ;;  %v1005_v50 = vadd.f32 %v1004_v25, %v1003_v29 }
 0x111   : > { %v849_v54 = vmul.f32 %v2294_v21, %v386_v42  ;;  %v989_v15 = vrot.slane %v988_v20, 1  ;;  %v1022_v19 = vadd.f32 %v1021_v60, %v1020_v47  ;;  %v1038_v26 = vrot.slane %v1037_v11, 2 }
 0x112   : > { %v2500_v43 = vadd.f32 %v921_v33, %v920_v7  ;;  %v2502_v45 = vadd.f32 %v938_v40, %v937_v14  ;;  %v2504_v46 = vadd.f32 %v955_v2, %v954_v44  ;;  %v1006_v61 = vrot.slane %v1005_v50, 1 }
 0x113   : > { %v2506_v48 = vadd.f32 %v972_v18, %v971_v58  ;;  %v1023_v57 = vrot.slane %v1022_v19, 1  ;;  %v2508_v30 = vadd.f32 %v1038_v26, %v1037_v11  ;;  %v1051_v17 = vsel %vm576_vm1, %v2443_v9, 0.0 }
 0x114   : > { %v2512_v8 = vadd.f32 %v989_v15, %v988_v20  ;;  %v1052_v55 = vadd.f32 %v1051_v17, %v2440_v24  ;;  %v1068_v36 = vsel %vm576_vm1, %v2452_v62, 0.0  ;;  %v1085_v29 = vsel %vm576_vm1, %v2458_v38, 0.0 }
 0x115   : > { %v2519_v7 = vadd.f32 %v1006_v61, %v1005_v50  ;;  %v2521_v12 = vadd.f32 %v1023_v57, %v1022_v19  ;;  %v1069_v47 = vadd.f32 %v1068_v36, %v2449_v5  ;;  %v1086_v59 = vadd.f32 %v1085_v29, %v2455_v0 }
 0x116   : > { %v1053_v42 = vrot.slane %v1052_v55, 4  ;;  %v1102_v9 = vsel %vm576_vm1, %v2465_v16, 0.0  ;;  %v1119_v24 = vsel %vm576_vm1, %v2471_v10, 0.0  ;;  %v1136_v62 = vsel %vm576_vm1, %v2477_v49, 0.0 }
 0x117   : > { %v1040_v38 = vrot.slane %v2508_v30, 1  ;;  %v1070_v14 = vrot.slane %v1069_v47, 4  ;;  %v1087_v44 = vrot.slane %v1086_v59, 4  ;;  %v1103_v58 = vadd.f32 %v1102_v9, %v2462_v13 }
 0x118   : > { %v1054_v25 = vadd.f32 %v1053_v42, %v1052_v55  ;;  %v1120_v5 = vadd.f32 %v1119_v24, %v2468_v37  ;;  %v1137_v0 = vadd.f32 %v1136_v62, %v2474_v63  ;;  %v1153_v16 = vsel %vm576_vm1, %v2483_v56, 0.0 }
 0x119   : > { %v1071_v33 = vadd.f32 %v1070_v14, %v1069_v47  ;;  %v1088_v20 = vadd.f32 %v1087_v44, %v1086_v59  ;;  %v1104_v10 = vrot.slane %v1103_v58, 4  ;;  %v1154_v60 = vadd.f32 %v1153_v16, %v2480_v23 }
 0x11a   : > { %v1055_v49 = vrot.slane %v1054_v25, 2  ;;  %v1121_v11 = vrot.slane %v1120_v5, 4  ;;  %v1138_v40 = vrot.slane %v1137_v0, 4  ;;  %v1170_v2 = vsel %vm576_vm1, %v849_v54, 0.0 }
 0x11b   : > { %v1072_v18 = vrot.slane %v1071_v33, 2  ;;  %v1089_v13 = vrot.slane %v1088_v20, 2  ;;  %v1105_v50 = vadd.f32 %v1104_v10, %v1103_v58  ;;  %v1155_v15 = vrot.slane %v1154_v60, 4 }
 0x11c   : > { %v1056_v37 = vadd.f32 %v1055_v49, %v1054_v25  ;;  %v1122_v19 = vadd.f32 %v1121_v11, %v1120_v5  ;;  %v1139_v63 = vadd.f32 %v1138_v40, %v1137_v0  ;;  %v1171_v26 = vadd.f32 %v1170_v2, %v2486_v34  ;;  %v389_v11 = vld [vmem:[%s2169_s15 + $0x208] sm:$0xff] }
 0x11d   : > { %v1073_v56 = vadd.f32 %v1072_v18, %v1071_v33  ;;  %v1090_v61 = vadd.f32 %v1089_v13, %v1088_v20  ;;  %v1106_v57 = vrot.slane %v1105_v50, 2  ;;  %v1156_v17 = vadd.f32 %v1155_v15, %v1154_v60  ;;  %v395_v15 = vld [vmem:[%s2169_s15 + $0x238] sm:$0x1] }
 0x11e   : > { %v1057_v55 = vrot.slane %v1056_v37, 1  ;;  %v1123_v23 = vrot.slane %v1122_v19, 2  ;;  %v1140_v36 = vrot.slane %v1139_v63, 2  ;;  %v1172_v29 = vrot.slane %v1171_v26, 4 }
 0x11f   : > { %v1074_v47 = vrot.slane %v1073_v56, 1  ;;  %v1091_v59 = vrot.slane %v1090_v61, 1  ;;  %v1107_v54 = vadd.f32 %v1106_v57, %v1105_v50  ;;  %v1157_v42 = vrot.slane %v1156_v17, 2  ;;  %v401_v57 = vld [vmem:[%s2169_s15 + $0x268] sm:$0xff] }
 0x120   : > { %v1058_v9 = vadd.f32 %v1057_v55, %v1056_v37  ;;  %v1124_v24 = vadd.f32 %v1123_v23, %v1122_v19  ;;  %v1141_v62 = vadd.f32 %v1140_v36, %v1139_v63  ;;  %v1173_v14 = vadd.f32 %v1172_v29, %v1171_v26  ;;  %v405_v37 = vld [vmem:[%s2169_s15 + $0x288] sm:$0xff]  ;;  %v407_v19 = vld [vmem:[%s2169_s15 + $0x298] sm:$0x1] }
 0x121   : > { %v1075_v44 = vadd.f32 %v1074_v47, %v1073_v56  ;;  %v1092_v58 = vadd.f32 %v1091_v59, %v1090_v61  ;;  %v1108_v34 = vrot.slane %v1107_v54, 1  ;;  %v1158_v25 = vadd.f32 %v1157_v42, %v1156_v17  ;;  %v397_v56 = vld [vmem:[%s2169_s15 + $0x248] sm:$0xff]  ;;  %v399_v61 = vld [vmem:[%s2169_s15 + $0x258] sm:$0x1] }
 0x122   : > { %v1125_v5 = vrot.slane %v1124_v24, 1  ;;  %v1142_v0 = vrot.slane %v1141_v62, 1  ;;  %v1174_v16 = vrot.slane %v1173_v14, 2  ;;  %v1552_v33 = vsel %vm1551_vm3, %v2502_v45, %v2500_v43  ;;  %v391_v45 = vld [vmem:[%s2169_s15 + $0x218] sm:$0x1] }
 0x123   : > { %v1041_v20 = vadd.f32 %v1040_v38, %v2508_v30  ;;  %v1109_v10 = vadd.f32 %v1108_v34, %v1107_v54  ;;  %v1159_v60 = vrot.slane %v1158_v25, 1  ;;  %v1554_v49 = vsel %vm1553_vm4, %v2504_v46, %v1552_v33  ;;  %v393_v30 = vld [vmem:[%s2169_s15 + $0x228] sm:$0xff]  ;;  %v403_v23 = vld [vmem:[%s2169_s15 + $0x278] sm:$0x1] }
 0x124   : > { %v1126_v40 = vadd.f32 %v1125_v5, %v1124_v24  ;;  %v1175_v2 = vadd.f32 %v1174_v16, %v1173_v14  ;;  %v1556_v18 = vsel %vm1555_vm5, %v2506_v48, %v1554_v49  ;;  %v1572_v43 = vsel %vm1551_vm3, %v1075_v44, %v1058_v9  ;;  %v411_v36 = vld [vmem:[%s2169_s15 + $0x2b8] sm:$0x1]  ;;  %v421_v9 = vld [vmem:[%s2169_s15 + $0x308] sm:$0xff] }
 0x125   : > { %v1143_v38 = vadd.f32 %v1142_v0, %v1141_v62  ;;  %v1160_v13 = vadd.f32 %v1159_v60, %v1158_v25  ;;  %v1558_v46 = vsel %vm1557_vm6, %v2512_v8, %v1556_v18  ;;  %v1573_v50 = vsel %vm1553_vm4, %v1092_v58, %v1572_v43  ;;  %v425_v24 = vld [vmem:[%s2169_s15 + $0x328] sm:$0xff]  ;;  %v415_v44 = vld [vmem:[%s2169_s15 + $0x2d8] sm:$0x1] }
 0x126   : > { %v1176_v63 = vrot.slane %v1175_v2, 1  ;;  %v1560_v48 = vsel %vm1559_vm7, %v2519_v7, %v1558_v46  ;;  %v1574_v26 = vsel %vm1555_vm5, %v1109_v10, %v1573_v50  ;;  %v852_v8 = vmul.f32 %v2217_v39, %v389_v11  ;;  %v409_v7 = vld [vmem:[%s2169_s15 + $0x2a8] sm:$0xff]  ;;  %v419_v34 = vld [vmem:[%s2169_s15 + $0x2f8] sm:$0x1] }
 0x127   : > { %v1562_v17 = vsel %vm1561_vm8, %v2521_v12, %v1560_v48  ;;  %v1575_v55 = vsel %vm1557_vm6, %v1126_v40, %v1574_v26  ;;  %v854_v29 = vmul.f32 %v2220_v6, %v391_v45  ;;  %v856_v47 = vmul.f32 %v2180_v3, %v393_v30  ;;  %v413_v12 = vld [vmem:[%s2169_s15 + $0x2c8] sm:$0xff]  ;;  %v423_v33 = vld [vmem:[%s2169_s15 + $0x318] sm:$0x1] }
 0x128   : > { %v1177_v59 = vadd.f32 %v1176_v63, %v1175_v2  ;;  %v1564_v54 = vsel %vm1563_vm9, %v1041_v20, %v1562_v17  ;;  %v1576_v42 = vsel %vm1559_vm7, %v1143_v38, %v1575_v55  ;;  %v858_v62 = vmul.f32 %v2183_v4, %v395_v15  ;;  %v417_v58 = vld [vmem:[%s2169_s15 + $0x2e8] sm:$0xff]  ;;  %v427_v20 = vld [vmem:[%s2169_s15 + $0x338] sm:$0x1] }
 0x129   : > { %v1577_v14 = vsel %vm1561_vm8, %v1160_v13, %v1576_v42  ;;  %v860_v25 = vmul.f32 %v2257_v53, %v397_v56  ;;  %v862_v5 = vmul.f32 %v2260_v1, %v399_v61  ;;  %v864_v0 = vmul.f32 %v2312_v31, %v401_v57  ;;  %v429_v10 = vld [vmem:[%s2169_s15 + $0x348] sm:$0xff]  ;;  %v431_v2 = vld [vmem:[%s2169_s15 + $0x358] sm:$0x1] }
 0x12a   : > { %v1578_v16 = vsel %vm1563_vm9, %v1177_v59, %v1577_v14  ;;  %v866_v60 = vmul.f32 %v2315_v32, %v403_v23  ;;  %v868_v49 = vmul.f32 %v2217_v39, %v405_v37  ;;  %v870_v11 = vmul.f32 %v2220_v6, %v407_v19  ;;  %v433_v18 = vld [vmem:[%s2169_s15 + $0x368] sm:$0xff]  ;;  %v435_v13 = vld [vmem:[%s2169_s15 + $0x378] sm:$0x1] }
 0x12b   : > { %v1837_v40 = vpack.c.bf16 %v1578_v16, %v1564_v54  ;;  %v437_v43 = vld [vmem:[%s2169_s15 + $0x388] sm:$0xff]  ;;  %v872_v45 = vmul.f32 %v2180_v3, %v409_v7  ;;  %v874_v30 = vmul.f32 %v2183_v4, %v411_v36  ;;  %v876_v38 = vmul.f32 %v2257_v53, %v413_v12  ;;  %v439_v46 = vld [vmem:[%s2169_s15 + $0x398] sm:$0x1] }
 0x12c   : > { %v441_v50 = vld [vmem:[%s2169_s15 + $0x3a8] sm:$0xff]  ;;  %v878_v15 = vmul.f32 %v2260_v1, %v415_v44  ;;  %v880_v37 = vmul.f32 %v2312_v31, %v417_v58  ;;  %v882_v19 = vmul.f32 %v2315_v32, %v419_v34  ;;  %v2606_v63 = vmul.f32 %v2217_v39, %v421_v9  ;;  %v443_v48 = vld [vmem:[%s2169_s15 + $0x3b8] sm:$0x1] }
 0x12d   : > { %1838 = vmatpush1.bf16.msra.mxu0 %v1837_v40  ;;  %1845 = vmatpush1.bf16.msra.mxu1 %v1837_v40  ;;  %v445_v26 = vld [vmem:[%s2169_s15 + $0x3c8] sm:$0xff]  ;;  %v447_v56 = vld [vmem:[%s2169_s15 + $0x3d8] sm:$0x1]  ;;  %v2612_v61 = vmul.f32 %v2220_v6, %v423_v33  ;;  %v2615_v57 = vmul.f32 %v2180_v3, %v425_v24  ;;  %v2618_v17 = vmul.f32 %v2183_v4, %v427_v20  ;;  %v1195_v36 = vsel %vm585_vm0, %v852_v8, 0.0 }
 0x12e   : > { %v2621_v55 = vmul.f32 %v2257_v53, %v429_v10  ;;  %v2624_v23 = vmul.f32 %v2260_v1, %v431_v2  ;;  %v2627_v7 = vmul.f32 %v2312_v31, %v433_v18  ;;  %v2631_v59 = vmul.f32 %v2315_v32, %v435_v13 }
 0x12f   : > { %v2634_v54 = vmul.f32 %v2217_v39, %v437_v43  ;;  %v2637_v42 = vmul.f32 %v2220_v6, %v439_v46  ;;  %v2640_v12 = vmul.f32 %v2180_v3, %v441_v50  ;;  %v2643_v9 = vmul.f32 %v2183_v4, %v443_v48 }
 0x130   : > { %v2646_v24 = vmul.f32 %v2257_v53, %v445_v26  ;;  %v2649_v8 = vmul.f32 %v2260_v1, %v447_v56  ;;  %v1196_v14 = vsel %vm587_vm2, %v854_v29, 0.0  ;;  %v1212_v39 = vsel %vm585_vm0, %v856_v47, 0.0 }
 0x131   : > { %v1197_v44 = vadd.f32 %v1196_v14, %v1195_v36  ;;  %v1213_v6 = vsel %vm587_vm2, %v858_v62, 0.0  ;;  %v1229_v58 = vsel %vm585_vm0, %v860_v25, 0.0  ;;  %v1230_v34 = vsel %vm587_vm2, %v862_v5, 0.0 }
 0x132   : > { %v1214_v3 = vadd.f32 %v1213_v6, %v1212_v39  ;;  %v1246_v4 = vsel %vm585_vm0, %v864_v0, 0.0  ;;  %v1247_v53 = vsel %vm587_vm2, %v866_v60, 0.0  ;;  %v1231_v33 = vadd.f32 %v1230_v34, %v1229_v58  ;;  %v451_v58 = vld [vmem:[%s2169_s15 + $0x3f8] sm:$0x1] }
 0x133   : > { %v1198_v16 = vrot.slane %v1197_v44, 4  ;;  %v1248_v1 = vadd.f32 %v1247_v53, %v1246_v4  ;;  %v1263_v20 = vsel %vm585_vm0, %v868_v49, 0.0  ;;  %v1264_v10 = vsel %vm587_vm2, %v870_v11, 0.0 }
 0x134   : > { %v1215_v29 = vrot.slane %v1214_v3, 4  ;;  %v1280_v47 = vsel %vm585_vm0, %v872_v45, 0.0  ;;  %v1281_v62 = vsel %vm587_vm2, %v874_v30, 0.0  ;;  %v1232_v40 = vrot.slane %v1231_v33, 4 }
 0x135   : > { %v1199_v25 = vadd.f32 %v1198_v16, %v1197_v44  ;;  %v1249_v2 = vrot.slane %v1248_v1, 4  ;;  %v1265_v5 = vadd.f32 %v1264_v10, %v1263_v20  ;;  %v1282_v0 = vadd.f32 %v1281_v62, %v1280_v47  ;;  %v449_v44 = vld [vmem:[%s2169_s15 + $0x3e8] sm:$0xff] }
 0x136   : > { %v1216_v18 = vadd.f32 %v1215_v29, %v1214_v3  ;;  %v1297_v60 = vsel %vm585_vm0, %v876_v38, 0.0  ;;  %v1298_v43 = vsel %vm587_vm2, %v878_v15, 0.0  ;;  %v1233_v49 = vadd.f32 %v1232_v40, %v1231_v33 }
 0x137   : > { %v1200_v13 = vrot.slane %v1199_v25, 2  ;;  %v1250_v46 = vadd.f32 %v1249_v2, %v1248_v1  ;;  %v1266_v11 = vrot.slane %v1265_v5, 4  ;;  %v1283_v45 = vrot.slane %v1282_v0, 4 }
 0x138   : > { %v1217_v50 = vrot.slane %v1216_v18, 2  ;;  %v1299_v48 = vadd.f32 %v1298_v43, %v1297_v60  ;;  %v1314_v30 = vsel %vm585_vm0, %v880_v37, 0.0  ;;  %v1234_v56 = vrot.slane %v1233_v49, 2 }
 0x139   : > { %v1201_v26 = vadd.f32 %v1200_v13, %v1199_v25  ;;  %v1251_v36 = vrot.slane %v1250_v46, 2  ;;  %v1267_v14 = vadd.f32 %v1266_v11, %v1265_v5  ;;  %v1284_v6 = vadd.f32 %v1283_v45, %v1282_v0 }
 0x13a   : > { %v1218_v39 = vadd.f32 %v1217_v50, %v1216_v18  ;;  %v1300_v38 = vrot.slane %v1299_v48, 4  ;;  %v1315_v15 = vsel %vm587_vm2, %v882_v19, 0.0  ;;  %v1235_v34 = vadd.f32 %v1234_v56, %v1233_v49 }
 0x13b   : > { %v1202_v3 = vrot.slane %v1201_v26, 1  ;;  %v1252_v4 = vadd.f32 %v1251_v36, %v1250_v46  ;;  %v1268_v53 = vrot.slane %v1267_v14, 2  ;;  %v1285_v33 = vrot.slane %v1284_v6, 2 }
 0x13c   : > { %v1219_v16 = vrot.slane %v1218_v39, 1  ;;  %v1301_v1 = vadd.f32 %v1300_v38, %v1299_v48  ;;  %v1316_v20 = vadd.f32 %v1315_v15, %v1314_v30  ;;  %v2669_v37 = vmul.f32 %v2312_v31, %v449_v44 }
 0x13d   : > { %v1236_v29 = vrot.slane %v1235_v34, 1  ;;  %v1253_v10 = vrot.slane %v1252_v4, 1  ;;  %v1269_v47 = vadd.f32 %v1268_v53, %v1267_v14  ;;  %v2672_v62 = vmul.f32 %v2315_v32, %v451_v58 }
 0x13e   : > { %v1286_v25 = vadd.f32 %v1285_v33, %v1284_v6  ;;  %v1302_v19 = vrot.slane %v1301_v1, 2  ;;  %v1317_v40 = vrot.slane %v1316_v20, 4  ;;  %v2674_v2 = vadd.f32 %v1202_v3, %v1201_v26 }
 0x13f   : > { %v2676_v5 = vadd.f32 %v1219_v16, %v1218_v39  ;;  %v1270_v18 = vrot.slane %v1269_v47, 1  ;;  %v1331_v0 = vsel %vm585_vm0, %v2606_v63, 0.0  ;;  %v2680_v60 = vadd.f32 %v1236_v29, %v1235_v34 }
 0x140   : > { %v1287_v31 = vrot.slane %v1286_v25, 1  ;;  %v1318_v43 = vadd.f32 %v1317_v40, %v1316_v20  ;;  %v1332_v13 = vsel %vm587_vm2, %v2612_v61, 0.0  ;;  %v2684_v32 = vadd.f32 %v1253_v10, %v1252_v4 }
 0x141   : > { %v1333_v49 = vadd.f32 %v1332_v13, %v1331_v0  ;;  %v1348_v46 = vsel %vm585_vm0, %v2615_v57, 0.0  ;;  %v1349_v11 = vsel %vm587_vm2, %v2618_v17, 0.0  ;;  %v2690_v50 = vadd.f32 %v1270_v18, %v1269_v47 }
 0x142   : > { %v1303_v45 = vadd.f32 %v1302_v19, %v1301_v1  ;;  %v1319_v63 = vrot.slane %v1318_v43, 2  ;;  %v1350_v48 = vadd.f32 %v1349_v11, %v1348_v46  ;;  %v1365_v26 = vsel %vm585_vm0, %v2621_v55, 0.0 }
 0x143   : > { %v1334_v30 = vrot.slane %v1333_v49, 4  ;;  %v1366_v61 = vsel %vm587_vm2, %v2624_v23, 0.0  ;;  %v1382_v56 = vsel %vm585_vm0, %v2627_v7, 0.0  ;;  %v2698_v36 = vadd.f32 %v1287_v31, %v1286_v25 }
 0x144   : > { %v1320_v57 = vadd.f32 %v1319_v63, %v1318_v43  ;;  %v1351_v14 = vrot.slane %v1350_v48, 4  ;;  %v1367_v17 = vadd.f32 %v1366_v61, %v1365_v26  ;;  %v1383_v39 = vsel %vm587_vm2, %v2631_v59, 0.0 }
 0x145   : > { %v1335_v44 = vadd.f32 %v1334_v30, %v1333_v49  ;;  %v1399_v6 = vsel %vm585_vm0, %v2634_v54, 0.0  ;;  %v1400_v55 = vsel %vm587_vm2, %v2637_v42, 0.0  ;;  %v1304_v38 = vrot.slane %v1303_v45, 1 }
 0x146   : > { %v1352_v23 = vadd.f32 %v1351_v14, %v1350_v48  ;;  %v1368_v15 = vrot.slane %v1367_v17, 4  ;;  %v1384_v58 = vadd.f32 %v1383_v39, %v1382_v56  ;;  %v1401_v3 = vadd.f32 %v1400_v55, %v1399_v6 }
 0x147   : > { %v1336_v7 = vrot.slane %v1335_v44, 2  ;;  %v1416_v34 = vsel %vm585_vm0, %v2640_v12, 0.0  ;;  %v1417_v4 = vsel %vm587_vm2, %v2643_v9, 0.0  ;;  %v1321_v53 = vrot.slane %v1320_v57, 1 }
 0x148   : > { %v1353_v59 = vrot.slane %v1352_v23, 2  ;;  %v1369_v16 = vadd.f32 %v1368_v15, %v1367_v17  ;;  %v1385_v33 = vrot.slane %v1384_v58, 4  ;;  %v1402_v1 = vrot.slane %v1401_v3, 4  ;;  %v388_v15 = vld [vmem:[%s2169_s15 + $0x200] sm:$0xff] }
 0x149   : > { %v1337_v54 = vadd.f32 %v1336_v7, %v1335_v44  ;;  %v1418_v20 = vadd.f32 %v1417_v4, %v1416_v34  ;;  %v1433_v42 = vsel %vm585_vm0, %v2646_v24, 0.0  ;;  %v1434_v25 = vsel %vm587_vm2, %v2649_v8, 0.0  ;;  %v392_v4 = vld [vmem:[%s2169_s15 + $0x220] sm:$0xff] }
 0x14a   : > { %v1354_v29 = vadd.f32 %v1353_v59, %v1352_v23  ;;  %v1370_v10 = vrot.slane %v1369_v16, 2  ;;  %v1386_v47 = vadd.f32 %v1385_v33, %v1384_v58  ;;  %v1403_v19 = vadd.f32 %v1402_v1, %v1401_v3 }
 0x14b   : > { %v1338_v12 = vrot.slane %v1337_v54, 1  ;;  %v1419_v40 = vrot.slane %v1418_v20, 4  ;;  %v1435_v9 = vadd.f32 %v1434_v25, %v1433_v42  ;;  %v1450_v43 = vsel %vm585_vm0, %v2669_v37, 0.0  ;;  %v396_v42 = vld [vmem:[%s2169_s15 + $0x240] sm:$0xff] }
 0x14c   : > { %v1355_v18 = vrot.slane %v1354_v29, 1  ;;  %v1371_v0 = vadd.f32 %v1370_v10, %v1369_v16  ;;  %v1387_v31 = vrot.slane %v1386_v47, 2  ;;  %v1404_v49 = vrot.slane %v1403_v19, 2  ;;  %v404_v10 = vld [vmem:[%s2169_s15 + $0x280] sm:$0xff] }
 0x14d   : > { %v1339_v13 = vadd.f32 %v1338_v12, %v1337_v54  ;;  %v1420_v46 = vadd.f32 %v1419_v40, %v1418_v20  ;;  %v1436_v24 = vrot.slane %v1435_v9, 4  ;;  %v1451_v8 = vsel %vm587_vm2, %v2672_v62, 0.0  ;;  %v400_v12 = vld [vmem:[%s2169_s15 + $0x260] sm:$0xff] }
 0x14e   : > { %v1356_v11 = vadd.f32 %v1355_v18, %v1354_v29  ;;  %v1372_v63 = vrot.slane %v1371_v0, 1  ;;  %v1388_v48 = vadd.f32 %v1387_v31, %v1386_v47  ;;  %v1405_v30 = vadd.f32 %v1404_v49, %v1403_v19  ;;  %v398_v29 = vld [vmem:[%s2169_s15 + $0x250] sm:$0x1]  ;;  %v408_v40 = vld [vmem:[%s2169_s15 + $0x2a0] sm:$0xff] }
 0x14f   : > { %v1421_v26 = vrot.slane %v1420_v46, 2  ;;  %v1437_v61 = vadd.f32 %v1436_v24, %v1435_v9  ;;  %v1452_v56 = vadd.f32 %v1451_v8, %v1450_v43  ;;  %v1305_v14 = vadd.f32 %v1304_v38, %v1303_v45  ;;  %v402_v19 = vld [vmem:[%s2169_s15 + $0x270] sm:$0x1]  ;;  %v412_v24 = vld [vmem:[%s2169_s15 + $0x2c0] sm:$0xff] }
 0x150   : > { %v1373_v17 = vadd.f32 %v1372_v63, %v1371_v0  ;;  %v1389_v44 = vrot.slane %v1388_v48, 1  ;;  %v1593_v37 = vsel %vm1551_vm3, %v2676_v5, %v2674_v2  ;;  %v1406_v39 = vrot.slane %v1405_v30, 1  ;;  %v390_v5 = vld [vmem:[%s2169_s15 + $0x210] sm:$0x1]  ;;  %v416_v63 = vld [vmem:[%s2169_s15 + $0x2e0] sm:$0xff] }
 0x151   : > { %v1422_v6 = vadd.f32 %v1421_v26, %v1420_v46  ;;  %v1438_v55 = vrot.slane %v1437_v61, 2  ;;  %v1453_v23 = vrot.slane %v1452_v56, 4  ;;  %v1322_v62 = vadd.f32 %v1321_v53, %v1320_v57  ;;  %v394_v53 = vld [vmem:[%s2169_s15 + $0x230] sm:$0x1] }
 0x152   : > { %v1390_v58 = vadd.f32 %v1389_v44, %v1388_v48  ;;  %v1594_v7 = vsel %vm1553_vm4, %v2680_v60, %v1593_v37  ;;  %v1607_v45 = vsel %vm1551_vm3, %v1356_v11, %v1339_v13  ;;  %v1407_v59 = vadd.f32 %v1406_v39, %v1405_v30  ;;  %v410_v43 = vld [vmem:[%s2169_s15 + $0x2b0] sm:$0x1]  ;;  %v420_v13 = vld [vmem:[%s2169_s15 + $0x300] sm:$0xff] }
 0x153   : > { %v1423_v38 = vrot.slane %v1422_v6, 1  ;;  %v1439_v3 = vadd.f32 %v1438_v55, %v1437_v61  ;;  %v1454_v34 = vadd.f32 %v1453_v23, %v1452_v56  ;;  %v1608_v2 = vsel %vm1553_vm4, %v1373_v17, %v1607_v45  ;;  %v422_v49 = vld [vmem:[%s2169_s15 + $0x310] sm:$0x1]  ;;  %v428_v39 = vld [vmem:[%s2169_s15 + $0x340] sm:$0xff] }
 0x154   : > { %v1595_v57 = vsel %vm1555_vm5, %v2684_v32, %v1594_v7  ;;  %v1609_v60 = vsel %vm1555_vm5, %v1390_v58, %v1608_v2  ;;  %v2733_v16 = vmul.f32 %v2205_v51, %v388_v15  ;;  %v406_v32 = vld [vmem:[%s2169_s15 + $0x290] sm:$0x1]  ;;  %v2749_v9 = vmul.f32 %v2174_v35, %v392_v4  ;;  %v436_v55 = vld [vmem:[%s2169_s15 + $0x380] sm:$0xff] }
 0x155   : > { %v1424_v33 = vadd.f32 %v1423_v38, %v1422_v6  ;;  %v1440_v54 = vrot.slane %v1439_v3, 1  ;;  %v1455_v1 = vrot.slane %v1454_v34, 2  ;;  %v1596_v20 = vsel %vm1557_vm6, %v2690_v50, %v1595_v57  ;;  %v414_v11 = vld [vmem:[%s2169_s15 + $0x2d0] sm:$0x1]  ;;  %v432_v45 = vld [vmem:[%s2169_s15 + $0x360] sm:$0xff] }
 0x156   : > { %v1597_v47 = vsel %vm1559_vm7, %v2698_v36, %v1596_v20  ;;  %v1610_v25 = vsel %vm1557_vm6, %v1407_v59, %v1609_v60  ;;  %v853_v50 = vmul.f32 %v2208_v52, %v390_v5  ;;  %v857_v48 = vmul.f32 %v2187_v41, %v394_v53  ;;  %v418_v56 = vld [vmem:[%s2169_s15 + $0x2f0] sm:$0x1]  ;;  %v440_v4 = vld [vmem:[%s2169_s15 + $0x3a0] sm:$0xff] }
 0x157   : > { %v1441_v18 = vadd.f32 %v1440_v54, %v1439_v3  ;;  %v1456_v0 = vadd.f32 %v1455_v1, %v1454_v34  ;;  %v1598_v31 = vsel %vm1561_vm8, %v1305_v14, %v1597_v47  ;;  %v1611_v36 = vsel %vm1559_vm7, %v1424_v33, %v1610_v25  ;;  %v424_v14 = vld [vmem:[%s2169_s15 + $0x320] sm:$0xff]  ;;  %v426_v17 = vld [vmem:[%s2169_s15 + $0x330] sm:$0x1] }
 0x158   : > { %v1599_v46 = vsel %vm1563_vm9, %v1322_v62, %v1598_v31  ;;  %v859_v8 = vmul.f32 %v2244_v27, %v396_v42  ;;  %v861_v30 = vmul.f32 %v2247_v28, %v398_v29  ;;  %v863_v44 = vmul.f32 %v2291_v22, %v400_v12  ;;  %v430_v6 = vld [vmem:[%s2169_s15 + $0x350] sm:$0x1]  ;;  %v444_v57 = vld [vmem:[%s2169_s15 + $0x3c0] sm:$0xff] }
 0x159   : > { %v1457_v26 = vrot.slane %v1456_v0, 1  ;;  %v1612_v61 = vsel %vm1561_vm8, %v1441_v18, %v1611_v36  ;;  %v865_v37 = vmul.f32 %v2294_v21, %v402_v19  ;;  %v867_v23 = vmul.f32 %v2205_v51, %v404_v10  ;;  %v434_v38 = vld [vmem:[%s2169_s15 + $0x370] sm:$0x1] }
 0x15a   : > { %v869_v15 = vmul.f32 %v2208_v52, %v406_v32  ;;  %v871_v62 = vmul.f32 %v2174_v35, %v408_v40  ;;  %v873_v58 = vmul.f32 %v2187_v41, %v410_v43  ;;  %v438_v3 = vld [vmem:[%s2169_s15 + $0x390] sm:$0x1]  ;;  %v875_v34 = vmul.f32 %v2244_v27, %v412_v24 }
 0x15b   : > { %v1458_v7 = vadd.f32 %v1457_v26, %v1456_v0  ;;  %v877_v2 = vmul.f32 %v2247_v28, %v414_v11  ;;  %v879_v5 = vmul.f32 %v2291_v22, %v416_v63  ;;  %v442_v59 = vld [vmem:[%s2169_s15 + $0x3b0] sm:$0x1]  ;;  %v881_v60 = vmul.f32 %v2294_v21, %v418_v56 }
 0x15c   : > { %v2787_v53 = vmul.f32 %v2205_v51, %v420_v13  ;;  %v2790_v33 = vmul.f32 %v2208_v52, %v422_v49  ;;  %v2793_v54 = vmul.f32 %v2174_v35, %v424_v14  ;;  %v446_v20 = vld [vmem:[%s2169_s15 + $0x3d0] sm:$0x1]  ;;  %v2798_v42 = vmul.f32 %v2187_v41, %v426_v17 }
 0x15d   : > { %v1613_v1 = vsel %vm1563_vm9, %v1458_v7, %v1612_v61  ;;  %v2801_v29 = vmul.f32 %v2244_v27, %v428_v39  ;;  %v2804_v10 = vmul.f32 %v2247_v28, %v430_v6  ;;  %v2807_v47 = vmul.f32 %v2291_v22, %v432_v45 }
 0x15e   : > { %v1839_v32 = vpack.c.bf16 %v1613_v1, %v1599_v46  ;;  %v2810_v25 = vmul.f32 %v2294_v21, %v434_v38  ;;  %v2813_v12 = vmul.f32 %v2205_v51, %v436_v55  ;;  %v2816_v19 = vmul.f32 %v2208_v52, %v438_v3 }
 0x15f   : > { %v2819_v40 = vmul.f32 %v2174_v35, %v440_v4  ;;  %v2822_v18 = vmul.f32 %v2187_v41, %v442_v59  ;;  %v2825_v0 = vmul.f32 %v2244_v27, %v444_v57  ;;  %v2828_v31 = vmul.f32 %v2247_v28, %v446_v20  ;;  %v450_v4 = vld [vmem:[%s2169_s15 + $0x3f0] sm:$0x1] }
 0x160   : > { %1840 = vmatprep.subr.bf16.mxu0 %v1839_v32  ;;  %1844 = vmatprep.subr.bf16.mxu1 %v1839_v32  ;;  %v1187_v51 = vsel %vm576_vm1, %v853_v50, 0.0  ;;  %v1204_v36 = vsel %vm576_vm1, %v857_v48, 0.0  ;;  %v1221_v52 = vsel %vm576_vm1, %v861_v30, 0.0  ;;  %v1238_v13 = vsel %vm576_vm1, %v865_v37, 0.0 }
 0x161   : > { %v1188_v35 = vadd.f32 %v1187_v51, %v2733_v16  ;;  %v1205_v43 = vadd.f32 %v1204_v36, %v2749_v9  ;;  %v1222_v41 = vadd.f32 %v1221_v52, %v859_v8  ;;  %v1239_v27 = vadd.f32 %v1238_v13, %v863_v44 }
 0x162   : > { %v1255_v49 = vsel %vm576_vm1, %v869_v15, 0.0  ;;  %v1272_v46 = vsel %vm576_vm1, %v873_v58, 0.0  ;;  %v1289_v28 = vsel %vm576_vm1, %v877_v2, 0.0  ;;  %v1306_v16 = vsel %vm576_vm1, %v881_v60, 0.0  ;;  %v448_v2 = vld [vmem:[%s2169_s15 + $0x3e0] sm:$0xff] }
 0x163   : > { %v1189_v24 = vrot.slane %v1188_v35, 4  ;;  %v1206_v50 = vrot.slane %v1205_v43, 4  ;;  %v1223_v11 = vrot.slane %v1222_v41, 4  ;;  %v1256_v63 = vadd.f32 %v1255_v49, %v867_v23 }
 0x164   : > { %v1240_v48 = vrot.slane %v1239_v27, 4  ;;  %v1273_v30 = vadd.f32 %v1272_v46, %v871_v62  ;;  %v1290_v26 = vadd.f32 %v1289_v28, %v875_v34  ;;  %v1307_v37 = vadd.f32 %v1306_v16, %v879_v5 }
 0x165   : > { %v1190_v9 = vadd.f32 %v1189_v24, %v1188_v35  ;;  %v1207_v8 = vadd.f32 %v1206_v50, %v1205_v43  ;;  %v1224_v61 = vadd.f32 %v1223_v11, %v1222_v41  ;;  %v1257_v56 = vrot.slane %v1256_v63, 4 }
 0x166   : > { %v1241_v14 = vadd.f32 %v1240_v48, %v1239_v27  ;;  %v1274_v17 = vrot.slane %v1273_v30, 4  ;;  %v1291_v44 = vrot.slane %v1290_v26, 4  ;;  %v1308_v7 = vrot.slane %v1307_v37, 4 }
 0x167   : > { %v1191_v39 = vrot.slane %v1190_v9, 2  ;;  %v1208_v6 = vrot.slane %v1207_v8, 2  ;;  %v1225_v55 = vrot.slane %v1224_v61, 2  ;;  %v1258_v15 = vadd.f32 %v1257_v56, %v1256_v63 }
 0x168   : > { %v1242_v23 = vrot.slane %v1241_v14, 2  ;;  %v1275_v58 = vadd.f32 %v1274_v17, %v1273_v30  ;;  %v1292_v62 = vadd.f32 %v1291_v44, %v1290_v26  ;;  %v1309_v1 = vadd.f32 %v1308_v7, %v1307_v37 }
 0x169   : > { %v1192_v45 = vadd.f32 %v1191_v39, %v1190_v9  ;;  %v1209_v38 = vadd.f32 %v1208_v6, %v1207_v8  ;;  %v1226_v3 = vadd.f32 %v1225_v55, %v1224_v61  ;;  %v1259_v34 = vrot.slane %v1258_v15, 2 }
 0x16a   : > { %v1243_v59 = vadd.f32 %v1242_v23, %v1241_v14  ;;  %v1276_v57 = vrot.slane %v1275_v58, 2  ;;  %v1293_v60 = vrot.slane %v1292_v62, 2  ;;  %v1310_v43 = vrot.slane %v1309_v1, 2 }
 0x16b   : > { %v1193_v20 = vrot.slane %v1192_v45, 1  ;;  %v1210_v5 = vrot.slane %v1209_v38, 1  ;;  %v1227_v32 = vrot.slane %v1226_v3, 1  ;;  %v1260_v51 = vadd.f32 %v1259_v34, %v1258_v15 }
 0x16c   : > { %v1244_v36 = vrot.slane %v1243_v59, 1  ;;  %v1277_v52 = vadd.f32 %v1276_v57, %v1275_v58  ;;  %v1294_v35 = vadd.f32 %v1293_v60, %v1292_v62  ;;  %v911_v41 = vmul.f32 %v2291_v22, %v448_v2 }
 0x16d   : > { %v913_v13 = vmul.f32 %v2294_v21, %v450_v4  ;;  %v2844_v27 = vadd.f32 %v1193_v20, %v1192_v45  ;;  %v1261_v49 = vrot.slane %v1260_v51, 1  ;;  %v2846_v46 = vadd.f32 %v1210_v5, %v1209_v38 }
 0x16e   : > { %v2848_v28 = vadd.f32 %v1227_v32, %v1226_v3  ;;  %v1278_v24 = vrot.slane %v1277_v52, 1  ;;  %v1295_v50 = vrot.slane %v1294_v35, 1  ;;  %v2850_v11 = vadd.f32 %v1244_v36, %v1243_v59 }
 0x16f   : > { %v1323_v63 = vsel %vm576_vm1, %v2790_v33, 0.0  ;;  %v1340_v48 = vsel %vm576_vm1, %v2798_v42, 0.0  ;;  %v1357_v22 = vsel %vm576_vm1, %v2804_v10, 0.0  ;;  %v2858_v21 = vadd.f32 %v1261_v49, %v1260_v51 }
 0x170   : > { %v2860_v30 = vadd.f32 %v1278_v24, %v1277_v52  ;;  %v2862_v26 = vadd.f32 %v1310_v43, %v1309_v1  ;;  %v1324_v16 = vadd.f32 %v1323_v63, %v2787_v53  ;;  %v1341_v9 = vadd.f32 %v1340_v48, %v2793_v54 }
 0x171   : > { %v1358_v8 = vadd.f32 %v1357_v22, %v2801_v29  ;;  %v1374_v33 = vsel %vm576_vm1, %v2810_v25, 0.0  ;;  %v1391_v42 = vsel %vm576_vm1, %v2816_v19, 0.0  ;;  %v2871_v61 = vadd.f32 %v1295_v50, %v1294_v35 }
 0x172   : > { %v1325_v10 = vrot.slane %v1324_v16, 4  ;;  %v1375_v56 = vadd.f32 %v1374_v33, %v2807_v47  ;;  %v1392_v14 = vadd.f32 %v1391_v42, %v2813_v12  ;;  %v1342_v17 = vrot.slane %v1341_v9, 4 }
 0x173   : > { %v1359_v44 = vrot.slane %v1358_v8, 4  ;;  %v1408_v53 = vsel %vm576_vm1, %v2822_v18, 0.0  ;;  %v1425_v54 = vsel %vm576_vm1, %v2828_v31, 0.0  ;;  %v1442_v47 = vsel %vm576_vm1, %v913_v13, 0.0 }
 0x174   : > { %v1326_v29 = vadd.f32 %v1325_v10, %v1324_v16  ;;  %v1376_v25 = vrot.slane %v1375_v56, 4  ;;  %v1393_v37 = vrot.slane %v1392_v14, 4  ;;  %v1409_v19 = vadd.f32 %v1408_v53, %v2819_v40 }
 0x175   : > { %v1343_v39 = vadd.f32 %v1342_v17, %v1341_v9  ;;  %v1360_v6 = vadd.f32 %v1359_v44, %v1358_v8  ;;  %v1426_v55 = vadd.f32 %v1425_v54, %v2825_v0  ;;  %v1443_v45 = vadd.f32 %v1442_v47, %v911_v41  ;;  %v1470_v47 = vpop.permute.xlu0 %1469 }
 0x176   : > { %v1327_v12 = vrot.slane %v1326_v29, 2  ;;  %v1377_v15 = vadd.f32 %v1376_v25, %v1375_v56  ;;  %v1394_v23 = vadd.f32 %v1393_v37, %v1392_v14  ;;  %v1410_v58 = vrot.slane %v1409_v19, 4 }
 0x177   : > { %v1344_v62 = vrot.slane %v1343_v39, 2  ;;  %v1361_v18 = vrot.slane %v1360_v6, 2  ;;  %v1427_v7 = vrot.slane %v1426_v55, 4  ;;  %v1444_v59 = vrot.slane %v1443_v45, 4 }
 0x178   : > { %v1328_v31 = vadd.f32 %v1327_v12, %v1326_v29  ;;  %v1378_v38 = vrot.slane %v1377_v15, 2  ;;  %v1395_v3 = vrot.slane %v1394_v23, 2  ;;  %v1411_v34 = vadd.f32 %v1410_v58, %v1409_v19  ;;  %v1475_v12 = vpop.permute.xlu1 %1474 }
 0x179   : > { %v1345_v2 = vadd.f32 %v1344_v62, %v1343_v39  ;;  %v1362_v40 = vadd.f32 %v1361_v18, %v1360_v6  ;;  %v1428_v4 = vadd.f32 %v1427_v7, %v1426_v55  ;;  %v1445_v51 = vadd.f32 %v1444_v59, %v1443_v45  ;;  %v1460_v6 = vld [vmem:[%s2933_s4 + $0x8] sm:$0xff]  ;;  %v1462_v55 = vld [vmem:[%s2933_s4 + $0x18] sm:$0xff] }
 0x17a   : > { %v1329_v57 = vrot.slane %v1328_v31, 1  ;;  %v1379_v0 = vadd.f32 %v1378_v38, %v1377_v15  ;;  %v1396_v60 = vadd.f32 %v1395_v3, %v1394_v23  ;;  %v1412_v1 = vrot.slane %v1411_v34, 2  ;;  %v1480_v15 = vpop.permute.xlu0 %1479 }
 0x17b   : > { %v1346_v20 = vrot.slane %v1345_v2, 1  ;;  %v1363_v5 = vrot.slane %v1362_v40, 1  ;;  %v1429_v32 = vrot.slane %v1428_v4, 2  ;;  %v1446_v24 = vrot.slane %v1445_v51, 2 }
 0x17c   : > { %v1330_v36 = vadd.f32 %v1329_v57, %v1328_v31  ;;  %v1380_v52 = vrot.slane %v1379_v0, 1  ;;  %v1397_v35 = vrot.slane %v1396_v60, 1  ;;  %v1413_v43 = vadd.f32 %v1412_v1, %v1411_v34  ;;  %v1485_v3 = vpop.permute.xlu1 %1484 }
 0x17d   : > { %v1347_v41 = vadd.f32 %v1346_v20, %v1345_v2  ;;  %v1364_v13 = vadd.f32 %v1363_v5, %v1362_v40  ;;  %v1430_v49 = vadd.f32 %v1429_v32, %v1428_v4  ;;  %v1312_v50 = vrot.slane %v2862_v26, 1 }
 0x17e   : > { %v1381_v63 = vadd.f32 %v1380_v52, %v1379_v0  ;;  %v1414_v48 = vrot.slane %v1413_v43, 1  ;;  %v1586_v22 = vsel %vm1551_vm3, %v2846_v46, %v2844_v27  ;;  %v1447_v9 = vadd.f32 %v1446_v24, %v1445_v51 }
 0x17f   : > { %v1431_v16 = vrot.slane %v1430_v49, 1  ;;  %v1587_v8 = vsel %vm1553_vm4, %v2848_v28, %v1586_v22  ;;  %v1600_v33 = vsel %vm1551_vm3, %v1347_v41, %v1330_v36  ;;  %v1398_v42 = vadd.f32 %v1397_v35, %v1396_v60 }
 0x180   : > { %v1588_v10 = vsel %vm1555_vm5, %v2850_v11, %v1587_v8  ;;  %v1601_v56 = vsel %vm1553_vm4, %v1364_v13, %v1600_v33  ;;  %v1415_v14 = vadd.f32 %v1414_v48, %v1413_v43  ;;  %v1448_v17 = vrot.slane %v1447_v9, 1 }
 0x181   : > { %v1589_v44 = vsel %vm1557_vm6, %v2858_v21, %v1588_v10  ;;  %v1602_v27 = vsel %vm1555_vm5, %v1381_v63, %v1601_v56  ;;  %v1916_v46 = vmov 0.0   ;;  %v1313_v28 = vadd.f32 %v1312_v50, %v2862_v26 }
 0x182   : > { %1699 = vmatprep.mubr.f32.mxu0 %v1916_v46  ;;  %1711 = vmatprep.mubr.f32.mxu1 %v1916_v46  ;;  %v1432_v53 = vadd.f32 %v1431_v16, %v1430_v49  ;;  %v1590_v54 = vsel %vm1559_vm7, %v2860_v30, %v1589_v44  ;;  %v1603_v11 = vsel %vm1557_vm6, %v1398_v42, %v1602_v27  ;;  %v1459_v30 = vld [vmem:[%s2933_s4] sm:$0xff] }
 0x183   : > { %v1449_v29 = vadd.f32 %v1448_v17, %v1447_v9  ;;  %v1591_v25 = vsel %vm1561_vm8, %v2871_v61, %v1590_v54  ;;  %v1604_v37 = vsel %vm1559_vm7, %v1415_v14, %v1603_v11  ;;  %v1461_v61 = vld [vmem:[%s2933_s4 + $0x10] sm:$0xff] }
 0x184   : > { %v1592_v21 = vsel %vm1563_vm9, %v1313_v28, %v1591_v25  ;;  %v1605_v19 = vsel %vm1561_vm8, %v1432_v53, %v1604_v37 }
 0x185   : > { %v1606_v39 = vsel %vm1563_vm9, %v1449_v29, %v1605_v19 }
 0x186   : > { %v1841_v26 = vpack.c.bf16 %v1606_v39, %v1592_v21 }
 0x188   : > { %1842 = vmatpush1.bf16.msra.mxu0 %v1841_v26  ;;  %1846 = vmatpush1.bf16.msra.mxu1 %v1841_v26 }
 0x18b   : > { %1826 = vmatmul.mubr.msk.f32.vlgmr.msra.gmra.mrb[0].mxu0 %vm1622_vm10, %v1459_v30  ;;  %1828 = vmatmul.mubr.msk.f32.vlgmr.msra.gmra.mrb[0].mxu1 %vm1622_vm10, %v1461_v61 }
 0x18c   : > { %1705 = vmatprep.mubr.f32.mxu0 %v1916_v46  ;;  %1717 = vmatprep.mubr.f32.mxu1 %v1916_v46 }
 0x18f   : > { %1827 = vmatmul.mubr.msk.f32.gmra.mrb[2].mxu0 %vm1622_vm10, %v1460_v6  ;;  %1829 = vmatmul.mubr.msk.f32.gmra.mrb[2].mxu1 %vm1622_vm10, %v1462_v55 }
 0x25e   : > { %v1701_v23 = vpop.f32.mrb[0].mxu0  ;;  %v1713_v58 = vpop.f32.mrb[0].mxu1 }
 0x25f   : > { %v1702_v62 = vadd.f32 %v1701_v23, %v1470_v47  ;;  %v1714_v18 = vadd.f32 %v1713_v58, %v1480_v15  ;;  %v1703_v7 = vpop.f32.mrb[1].mxu0  ;;  %v1715_v45 = vpop.f32.mrb[1].mxu1 }
 0x260   : > { %v1704_v31 = vadd.f32 %v1703_v7, %v1470_v47  ;;  %v1716_v38 = vadd.f32 %v1715_v45, %v1480_v15 }
 0x261   : > { %1724 = vst [vmem:[%s303_s29] sm:$0xff] %v1702_v62  ;;  %1728 = vst [vmem:[%s303_s29 + $0x20] sm:$0xff] %v1714_v18 }
 0x262   : > { %1725 = vst.msk [vmem:[%s303_s29 + $0x8] sm:$0xff] %vm585_vm0, %v1704_v31  ;;  %1729 = vst.msk [vmem:[%s303_s29 + $0x28] sm:$0xff] %vm585_vm0, %v1716_v38  ;;  %v1707_v34 = vpop.f32.mrb[2].mxu0  ;;  %v1719_v2 = vpop.f32.mrb[2].mxu1 }
 0x263   : > { %v1708_v40 = vadd.f32 %v1707_v34, %v1475_v12  ;;  %v1720_v4 = vadd.f32 %v1719_v2, %v1485_v3  ;;  %v1709_v59 = vpop.f32.mrb[3].mxu0  ;;  %v1721_v57 = vpop.f32.mrb[3].mxu1 }
 0x264   : > { %v1710_v0 = vadd.f32 %v1709_v59, %v1475_v12  ;;  %v1722_v60 = vadd.f32 %v1721_v57, %v1485_v3 }
 0x265   : > { %1726 = vst [vmem:[%s303_s29 + $0x10] sm:$0xff] %v1708_v40  ;;  %1730 = vst [vmem:[%s303_s29 + $0x30] sm:$0xff] %v1720_v4 }
 0x266   : > { %1727 = vst.msk [vmem:[%s303_s29 + $0x18] sm:$0xff] %vm585_vm0, %v1710_v0  ;;  %1731 = vst.msk [vmem:[%s303_s29 + $0x38] sm:$0xff] %vm585_vm0, %v1722_v60 }
 0x267 PF: > { %s16_s21 = sadd.s32 1, %s1913_s21  }
 0x268   : > { %p13_p6 = scmp.ge.s32.totalorder %s16_s21, 4  }
 0x26a   :  { %15 = sbr.rel (!%p13_p6) target bundleno = 1 (0x1), region = 80 }

</bundles_post_ra>
